<compile_context>
chip_gen: v6e
topology: v6e:2x2x1
jax: 0.10.0
libtpu: 0.0.40
codegen_flags: <defaults>
</compile_context>

<pallas_src>
import functools

import jax
import jax.numpy as jnp
from jax import lax
from jax.experimental import pallas as pl
from jax.experimental.pallas import tpu as pltpu

LANES = 128


def _ghmr_kernel(pred_ref, target_ref, out_ref, cnt_acc, ls_acc, *,
                 mu, bins, alpha, total, tile_rows):
    pid = pl.program_id(0)

    # ---- init accumulators on the first grid step ---------------------------
    @pl.when(pid == 0)
    def _():
        for j in range(bins + 1):
            cnt_acc[j] = jnp.float32(0.0)
            ls_acc[j] = jnp.float32(0.0)

    # ---- per-tile elementwise work ------------------------------------------
    pred = pred_ref[...]
    target = target_ref[...]

    inv_2mu = 1.0 / (2.0 * mu)          # precomputed: no per-element divide
    half_mu = 0.5 * mu

    diff = jnp.abs(pred - target)
    loss = jnp.where(diff < mu, diff * diff * inv_2mu, diff - half_mu)

    g = jnp.abs(jnp.tanh(pred) - jnp.tanh(target))
    scaled = g * jnp.float32(bins)      # floor(scaled) is the (unclipped) bin index

    # Validity from iota (no mask input): global flat index < total.
    row_iota = lax.broadcasted_iota(jnp.int32, (tile_rows, LANES), 0)
    lane_iota = lax.broadcasted_iota(jnp.int32, (tile_rows, LANES), 1)
    gidx = pid * (tile_rows * LANES) + row_iota * LANES + lane_iota
    valid = gidx < total

    # Padding contributes 0 to the loss sums (pred==target==0 -> loss==0) but must be
    # excluded from the bin counts -> force its g below edge 0.
    g_cnt = jnp.where(valid, g, jnp.float32(-1.0))
    loss_v = jnp.where(valid, loss, jnp.float32(0.0))

    # ---- factored reduction: cumulative per-threshold partial sums -----------
    #   C_j = #(valid & g >= edge_j)              j = 0..bins
    #   L_j = sum(loss | valid & g*bins >= j)     j = 0..bins-1   (L_bins == 0)
    for j in range(bins + 1):
        edge_j = j / bins               # Python float; rounds to the same f32 edge as ref
        c_j = jnp.sum((g_cnt >= edge_j).astype(jnp.float32))
        cnt_acc[j] = cnt_acc[j] + c_j
        if j < bins:
            l_j = jnp.sum(jnp.where(scaled >= jnp.float32(j), loss_v, jnp.float32(0.0)))
            ls_acc[j] = ls_acc[j] + l_j

    # ---- epilogue: per-bin weights + final dot, only on the last grid step ---
    @pl.when(pid == pl.num_programs(0) - 1)
    def _():
        lane = lax.broadcasted_iota(jnp.int32, (1, LANES), 1)
        zeros = jnp.zeros((1, LANES), jnp.float32)
        c_lo = zeros
        c_hi = zeros
        l_lo = zeros
        l_hi = zeros
        for b in range(bins):
            c_lo = jnp.where(lane == b, cnt_acc[b], c_lo)
            c_hi = jnp.where(lane == b, cnt_acc[b + 1], c_hi)
            l_lo = jnp.where(lane == b, ls_acc[b], l_lo)
            l_hi = jnp.where(lane == b, ls_acc[b + 1], l_hi)
        counts = c_lo - c_hi            # per-bin edge-check counts   (lane b = bin b)
        loss_sums = l_lo - l_hi         # per-bin loss sums under the bin_idx partition
        # w_b = clamp(count_b, min=1) ** (-alpha), computed once, vectorized (EUP).
        w = jnp.exp(jnp.float32(-alpha) * jnp.log(jnp.maximum(counts, jnp.float32(1.0))))
        contrib = jnp.where(lane < bins, w * loss_sums, jnp.float32(0.0))
        out_ref[0, 0] = jnp.sum(contrib) * jnp.float32(1.0 / total)


def ghmr_loss_pallas(pred, target, mu=0.02, bins=10, alpha=0.75, epsilon=1e-07):
    # epsilon is part of the module's API but unused in its forward pass.
    del epsilon
    assert pred.shape == target.shape
    total = int(pred.size)

    rows_needed = -(-total // LANES)
    # Tile rows: multiple of 8, capped at 512 (f32 (512,128) tile = 256 KiB per input per
    # buffer -> comfortably within v7x's smaller scoped VMEM with double-buffering).
    tile_rows = min(512, ((rows_needed + 7) // 8) * 8)
    grid_n = -(-rows_needed // tile_rows)
    padded_rows = grid_n * tile_rows
    pad = padded_rows * LANES - total

    p2 = jnp.pad(pred.reshape(-1).astype(jnp.float32), (0, pad)).reshape(padded_rows, LANES)
    t2 = jnp.pad(target.reshape(-1).astype(jnp.float32), (0, pad)).reshape(padded_rows, LANES)

    kernel = functools.partial(
        _ghmr_kernel,
        mu=float(mu), bins=int(bins), alpha=float(alpha),
        total=total, tile_rows=tile_rows,
    )

    out = pl.pallas_call(
        kernel,
        out_shape=jax.ShapeDtypeStruct((1, 1), jnp.float32),
        grid=(grid_n,),
        in_specs=[
            pl.BlockSpec((tile_rows, LANES), lambda i: (i, 0)),
            pl.BlockSpec((tile_rows, LANES), lambda i: (i, 0)),
        ],
        out_specs=pl.BlockSpec((1, 1), lambda i: (0, 0),
                               memory_space=pltpu.MemorySpace.SMEM),
        scratch_shapes=[
            pltpu.SMEM((int(bins) + 1,), jnp.float32),   # cumulative counts C_0..C_bins
            pltpu.SMEM((int(bins) + 1,), jnp.float32),   # cumulative loss sums L_0..L_bins
        ],
        compiler_params=pltpu.CompilerParams(dimension_semantics=("arbitrary",)),
    )(p2, t2)
    return out[0, 0]


def ghmr_loss_ref(pred, target, mu=0.02, bins=10, alpha=0.75):
    """Pure-JAX reference mirroring the PyTorch module exactly."""
    pred = pred.astype(jnp.float32)
    target = target.astype(jnp.float32)
    diff = jnp.abs(pred - target)
    loss = jnp.where(diff < mu, 0.5 * diff * diff / mu, diff - 0.5 * mu)
    g = jnp.abs(jnp.tanh(pred) - jnp.tanh(target))
    edges = jnp.arange(0, bins + 1, dtype=jnp.float32) / bins
    tot = jnp.array(
        [jnp.sum((g >= edges[i]) & (g < edges[i + 1])) for i in range(bins)],
        dtype=jnp.float32,
    )
    w = jnp.maximum(tot, 1.0) ** (-alpha)
    bin_idx = jnp.clip(jnp.floor(g * bins).astype(jnp.int32), 0, bins - 1)
    sample_w = w[bin_idx]
    return jnp.mean(loss * sample_w)


if __name__ == "__main__":
    key = jax.random.PRNGKey(0)
    k1, k2 = jax.random.split(key)
    # small shapes consistent with a regression-map loss input (NCHW)
    pred = jax.random.normal(k1, (2, 4, 16, 16), dtype=jnp.float32)
    target = jax.random.normal(k2, (2, 4, 16, 16), dtype=jnp.float32)

    out = jax.block_until_ready(ghmr_loss_pallas(pred, target))
    ref = jax.block_until_ready(ghmr_loss_ref(pred, target))

    # f32 reassociation (per-bin partial sums vs elementwise mean) -> allow slightly
    # looser rtol than exact bitwise agreement.
    assert jnp.allclose(out, ref, rtol=1e-4, atol=1e-6), (out, ref)

    print("KERNEL_OK")
</pallas_src>

<mosaic_0001>
module attributes {stable_mosaic.version = 11 : i64} {
  func.func @_ghmr_kernel(%arg0: i32, %arg1: memref<16x128xf32, #tpu.memory_space<vmem>>, %arg2: memref<16x128xf32, #tpu.memory_space<vmem>>, %arg3: memref<1x1xf32, #tpu.memory_space<smem>>, %arg4: memref<11xf32, #tpu.memory_space<smem>>, %arg5: memref<11xf32, #tpu.memory_space<smem>>) attributes {dimension_semantics = [#tpu.dimension_semantics<arbitrary>], iteration_bounds = array<i64: 1>, scalar_prefetch = 0 : i64, scratch_operands = 2 : i64, tpu.core_type = #tpu.core_type<tc>, window_params = [{transform_indices = @transform_0, window_bounds = array<i64: 16, 128>}, {transform_indices = @transform_1, window_bounds = array<i64: 16, 128>}, {transform_indices = @transform_2, window_bounds = array<i64: 1, 1>}]} {
    %c0_i32 = arith.constant 0 : i32
    %0 = arith.cmpi eq, %arg0, %c0_i32 : i32
    %1 = arith.extui %0 : i1 to i32
    %c0_i32_0 = arith.constant 0 : i32
    %2 = arith.cmpi ne, %1, %c0_i32_0 : i32
    scf.if %2 {
      %cst_96 = arith.constant 0.000000e+00 : f32
      %c0_97 = arith.constant 0 : index
      %269 = memref.load %arg4[%c0_97] : memref<11xf32, #tpu.memory_space<smem>>
      memref.store %cst_96, %arg4[%c0_97] : memref<11xf32, #tpu.memory_space<smem>>
      %cst_98 = arith.constant 0.000000e+00 : f32
      %c0_99 = arith.constant 0 : index
      %270 = memref.load %arg5[%c0_99] : memref<11xf32, #tpu.memory_space<smem>>
      memref.store %cst_98, %arg5[%c0_99] : memref<11xf32, #tpu.memory_space<smem>>
      %cst_100 = arith.constant 0.000000e+00 : f32
      %c1_101 = arith.constant 1 : index
      %271 = memref.load %arg4[%c1_101] : memref<11xf32, #tpu.memory_space<smem>>
      memref.store %cst_100, %arg4[%c1_101] : memref<11xf32, #tpu.memory_space<smem>>
      %cst_102 = arith.constant 0.000000e+00 : f32
      %c1_103 = arith.constant 1 : index
      %272 = memref.load %arg5[%c1_103] : memref<11xf32, #tpu.memory_space<smem>>
      memref.store %cst_102, %arg5[%c1_103] : memref<11xf32, #tpu.memory_space<smem>>
      %cst_104 = arith.constant 0.000000e+00 : f32
      %c2_105 = arith.constant 2 : index
      %273 = memref.load %arg4[%c2_105] : memref<11xf32, #tpu.memory_space<smem>>
      memref.store %cst_104, %arg4[%c2_105] : memref<11xf32, #tpu.memory_space<smem>>
      %cst_106 = arith.constant 0.000000e+00 : f32
      %c2_107 = arith.constant 2 : index
      %274 = memref.load %arg5[%c2_107] : memref<11xf32, #tpu.memory_space<smem>>
      memref.store %cst_106, %arg5[%c2_107] : memref<11xf32, #tpu.memory_space<smem>>
      %cst_108 = arith.constant 0.000000e+00 : f32
      %c3_109 = arith.constant 3 : index
      %275 = memref.load %arg4[%c3_109] : memref<11xf32, #tpu.memory_space<smem>>
      memref.store %cst_108, %arg4[%c3_109] : memref<11xf32, #tpu.memory_space<smem>>
      %cst_110 = arith.constant 0.000000e+00 : f32
      %c3_111 = arith.constant 3 : index
      %276 = memref.load %arg5[%c3_111] : memref<11xf32, #tpu.memory_space<smem>>
      memref.store %cst_110, %arg5[%c3_111] : memref<11xf32, #tpu.memory_space<smem>>
      %cst_112 = arith.constant 0.000000e+00 : f32
      %c4_113 = arith.constant 4 : index
      %277 = memref.load %arg4[%c4_113] : memref<11xf32, #tpu.memory_space<smem>>
      memref.store %cst_112, %arg4[%c4_113] : memref<11xf32, #tpu.memory_space<smem>>
      %cst_114 = arith.constant 0.000000e+00 : f32
      %c4_115 = arith.constant 4 : index
      %278 = memref.load %arg5[%c4_115] : memref<11xf32, #tpu.memory_space<smem>>
      memref.store %cst_114, %arg5[%c4_115] : memref<11xf32, #tpu.memory_space<smem>>
      %cst_116 = arith.constant 0.000000e+00 : f32
      %c5_117 = arith.constant 5 : index
      %279 = memref.load %arg4[%c5_117] : memref<11xf32, #tpu.memory_space<smem>>
      memref.store %cst_116, %arg4[%c5_117] : memref<11xf32, #tpu.memory_space<smem>>
      %cst_118 = arith.constant 0.000000e+00 : f32
      %c5_119 = arith.constant 5 : index
      %280 = memref.load %arg5[%c5_119] : memref<11xf32, #tpu.memory_space<smem>>
      memref.store %cst_118, %arg5[%c5_119] : memref<11xf32, #tpu.memory_space<smem>>
      %cst_120 = arith.constant 0.000000e+00 : f32
      %c6_121 = arith.constant 6 : index
      %281 = memref.load %arg4[%c6_121] : memref<11xf32, #tpu.memory_space<smem>>
      memref.store %cst_120, %arg4[%c6_121] : memref<11xf32, #tpu.memory_space<smem>>
      %cst_122 = arith.constant 0.000000e+00 : f32
      %c6_123 = arith.constant 6 : index
      %282 = memref.load %arg5[%c6_123] : memref<11xf32, #tpu.memory_space<smem>>
      memref.store %cst_122, %arg5[%c6_123] : memref<11xf32, #tpu.memory_space<smem>>
      %cst_124 = arith.constant 0.000000e+00 : f32
      %c7_125 = arith.constant 7 : index
      %283 = memref.load %arg4[%c7_125] : memref<11xf32, #tpu.memory_space<smem>>
      memref.store %cst_124, %arg4[%c7_125] : memref<11xf32, #tpu.memory_space<smem>>
      %cst_126 = arith.constant 0.000000e+00 : f32
      %c7_127 = arith.constant 7 : index
      %284 = memref.load %arg5[%c7_127] : memref<11xf32, #tpu.memory_space<smem>>
      memref.store %cst_126, %arg5[%c7_127] : memref<11xf32, #tpu.memory_space<smem>>
      %cst_128 = arith.constant 0.000000e+00 : f32
      %c8_129 = arith.constant 8 : index
      %285 = memref.load %arg4[%c8_129] : memref<11xf32, #tpu.memory_space<smem>>
      memref.store %cst_128, %arg4[%c8_129] : memref<11xf32, #tpu.memory_space<smem>>
      %cst_130 = arith.constant 0.000000e+00 : f32
      %c8_131 = arith.constant 8 : index
      %286 = memref.load %arg5[%c8_131] : memref<11xf32, #tpu.memory_space<smem>>
      memref.store %cst_130, %arg5[%c8_131] : memref<11xf32, #tpu.memory_space<smem>>
      %cst_132 = arith.constant 0.000000e+00 : f32
      %c9_133 = arith.constant 9 : index
      %287 = memref.load %arg4[%c9_133] : memref<11xf32, #tpu.memory_space<smem>>
      memref.store %cst_132, %arg4[%c9_133] : memref<11xf32, #tpu.memory_space<smem>>
      %cst_134 = arith.constant 0.000000e+00 : f32
      %c9_135 = arith.constant 9 : index
      %288 = memref.load %arg5[%c9_135] : memref<11xf32, #tpu.memory_space<smem>>
      memref.store %cst_134, %arg5[%c9_135] : memref<11xf32, #tpu.memory_space<smem>>
      %cst_136 = arith.constant 0.000000e+00 : f32
      %c10_137 = arith.constant 10 : index
      %289 = memref.load %arg4[%c10_137] : memref<11xf32, #tpu.memory_space<smem>>
      memref.store %cst_136, %arg4[%c10_137] : memref<11xf32, #tpu.memory_space<smem>>
      %cst_138 = arith.constant 0.000000e+00 : f32
      %c10_139 = arith.constant 10 : index
      %290 = memref.load %arg5[%c10_139] : memref<11xf32, #tpu.memory_space<smem>>
      memref.store %cst_138, %arg5[%c10_139] : memref<11xf32, #tpu.memory_space<smem>>
    } else {
    }
    %c0 = arith.constant 0 : index
    %c0_1 = arith.constant 0 : index
    %3 = vector.load %arg1[%c0, %c0_1] : memref<16x128xf32, #tpu.memory_space<vmem>>, vector<16x128xf32>
    %c0_2 = arith.constant 0 : index
    %c0_3 = arith.constant 0 : index
    %4 = vector.load %arg2[%c0_2, %c0_3] : memref<16x128xf32, #tpu.memory_space<vmem>>, vector<16x128xf32>
    %5 = arith.subf %3, %4 : vector<16x128xf32>
    %6 = math.absf %5 : vector<16x128xf32>
    %cst = arith.constant 2.000000e-02 : f32
    %7 = vector.broadcast %cst : f32 to vector<16x128xf32>
    %8 = arith.cmpf olt, %6, %7 : vector<16x128xf32>
    %9 = arith.mulf %6, %6 : vector<16x128xf32>
    %cst_4 = arith.constant 2.500000e+01 : f32
    %10 = vector.broadcast %cst_4 : f32 to vector<16x128xf32>
    %11 = arith.mulf %9, %10 : vector<16x128xf32>
    %cst_5 = arith.constant 0.00999999977 : f32
    %12 = vector.broadcast %cst_5 : f32 to vector<16x128xf32>
    %13 = arith.subf %6, %12 : vector<16x128xf32>
    %14 = arith.select %8, %11, %13 : vector<16x128xi1>, vector<16x128xf32>
    %15 = math.tanh %3 : vector<16x128xf32>
    %16 = math.tanh %4 : vector<16x128xf32>
    %17 = arith.subf %15, %16 : vector<16x128xf32>
    %18 = math.absf %17 : vector<16x128xf32>
    %cst_6 = arith.constant 1.000000e+01 : f32
    %19 = vector.broadcast %cst_6 : f32 to vector<16x128xf32>
    %20 = arith.mulf %18, %19 : vector<16x128xf32>
    %21 = tpu.iota {dimensions = array<i32: 0>} : vector<16x128xi32>
    %22 = tpu.iota {dimensions = array<i32: 1>} : vector<16x128xi32>
    %c2048_i32 = arith.constant 2048 : i32
    %23 = arith.muli %arg0, %c2048_i32 : i32
    %c128_i32 = arith.constant 128 : i32
    %24 = vector.broadcast %c128_i32 : i32 to vector<16x128xi32>
    %25 = arith.muli %21, %24 : vector<16x128xi32>
    %26 = vector.broadcast %23 : i32 to vector<16x128xi32>
    %27 = arith.addi %26, %25 : vector<16x128xi32>
    %28 = arith.addi %27, %22 : vector<16x128xi32>
    %c2048_i32_7 = arith.constant 2048 : i32
    %29 = vector.broadcast %c2048_i32_7 : i32 to vector<16x128xi32>
    %30 = arith.cmpi slt, %28, %29 : vector<16x128xi32>
    %cst_8 = arith.constant -1.000000e+00 : f32
    %31 = vector.broadcast %cst_8 : f32 to vector<16x128xf32>
    %32 = arith.select %30, %18, %31 : vector<16x128xi1>, vector<16x128xf32>
    %cst_9 = arith.constant 0.000000e+00 : f32
    %33 = vector.broadcast %cst_9 : f32 to vector<16x128xf32>
    %34 = arith.select %30, %14, %33 : vector<16x128xi1>, vector<16x128xf32>
    %cst_10 = arith.constant 0.000000e+00 : f32
    %35 = vector.broadcast %cst_10 : f32 to vector<16x128xf32>
    %36 = arith.cmpf oge, %32, %35 : vector<16x128xf32>
    %37 = arith.extui %36 : vector<16x128xi1> to vector<16x128xi32>
    %38 = arith.sitofp %37 : vector<16x128xi32> to vector<16x128xf32>
    %39 = vector.shape_cast %38 : vector<16x128xf32> to vector<1x16x128xf32>
    %cst_11 = arith.constant dense<0.000000e+00> : vector<1xf32>
    %40 = vector.multi_reduction <add>, %39, %cst_11 [1, 2] : vector<1x16x128xf32> to vector<1xf32>
    %41 = vector.shape_cast %40 : vector<1xf32> to vector<1x1x1xf32>
    %42 = vector.extract %41[0, 0, 0] : f32 from vector<1x1x1xf32>
    %c0_12 = arith.constant 0 : index
    %43 = memref.load %arg4[%c0_12] : memref<11xf32, #tpu.memory_space<smem>>
    %44 = arith.addf %43, %42 : f32
    %c0_13 = arith.constant 0 : index
    %45 = memref.load %arg4[%c0_13] : memref<11xf32, #tpu.memory_space<smem>>
    memref.store %44, %arg4[%c0_13] : memref<11xf32, #tpu.memory_space<smem>>
    %cst_14 = arith.constant 0.000000e+00 : f32
    %46 = vector.broadcast %cst_14 : f32 to vector<16x128xf32>
    %47 = arith.cmpf oge, %20, %46 : vector<16x128xf32>
    %cst_15 = arith.constant 0.000000e+00 : f32
    %48 = vector.broadcast %cst_15 : f32 to vector<16x128xf32>
    %49 = arith.select %47, %34, %48 : vector<16x128xi1>, vector<16x128xf32>
    %50 = vector.shape_cast %49 : vector<16x128xf32> to vector<1x16x128xf32>
    %cst_16 = arith.constant dense<0.000000e+00> : vector<1xf32>
    %51 = vector.multi_reduction <add>, %50, %cst_16 [1, 2] : vector<1x16x128xf32> to vector<1xf32>
    %52 = vector.shape_cast %51 : vector<1xf32> to vector<1x1x1xf32>
    %53 = vector.extract %52[0, 0, 0] : f32 from vector<1x1x1xf32>
    %c0_17 = arith.constant 0 : index
    %54 = memref.load %arg5[%c0_17] : memref<11xf32, #tpu.memory_space<smem>>
    %55 = arith.addf %54, %53 : f32
    %c0_18 = arith.constant 0 : index
    %56 = memref.load %arg5[%c0_18] : memref<11xf32, #tpu.memory_space<smem>>
    memref.store %55, %arg5[%c0_18] : memref<11xf32, #tpu.memory_space<smem>>
    %cst_19 = arith.constant 1.000000e-01 : f32
    %57 = vector.broadcast %cst_19 : f32 to vector<16x128xf32>
    %58 = arith.cmpf oge, %32, %57 : vector<16x128xf32>
    %59 = arith.extui %58 : vector<16x128xi1> to vector<16x128xi32>
    %60 = arith.sitofp %59 : vector<16x128xi32> to vector<16x128xf32>
    %61 = vector.shape_cast %60 : vector<16x128xf32> to vector<1x16x128xf32>
    %cst_20 = arith.constant dense<0.000000e+00> : vector<1xf32>
    %62 = vector.multi_reduction <add>, %61, %cst_20 [1, 2] : vector<1x16x128xf32> to vector<1xf32>
    %63 = vector.shape_cast %62 : vector<1xf32> to vector<1x1x1xf32>
    %64 = vector.extract %63[0, 0, 0] : f32 from vector<1x1x1xf32>
    %c1 = arith.constant 1 : index
    %65 = memref.load %arg4[%c1] : memref<11xf32, #tpu.memory_space<smem>>
    %66 = arith.addf %65, %64 : f32
    %c1_21 = arith.constant 1 : index
    %67 = memref.load %arg4[%c1_21] : memref<11xf32, #tpu.memory_space<smem>>
    memref.store %66, %arg4[%c1_21] : memref<11xf32, #tpu.memory_space<smem>>
    %cst_22 = arith.constant 1.000000e+00 : f32
    %68 = vector.broadcast %cst_22 : f32 to vector<16x128xf32>
    %69 = arith.cmpf oge, %20, %68 : vector<16x128xf32>
    %cst_23 = arith.constant 0.000000e+00 : f32
    %70 = vector.broadcast %cst_23 : f32 to vector<16x128xf32>
    %71 = arith.select %69, %34, %70 : vector<16x128xi1>, vector<16x128xf32>
    %72 = vector.shape_cast %71 : vector<16x128xf32> to vector<1x16x128xf32>
    %cst_24 = arith.constant dense<0.000000e+00> : vector<1xf32>
    %73 = vector.multi_reduction <add>, %72, %cst_24 [1, 2] : vector<1x16x128xf32> to vector<1xf32>
    %74 = vector.shape_cast %73 : vector<1xf32> to vector<1x1x1xf32>
    %75 = vector.extract %74[0, 0, 0] : f32 from vector<1x1x1xf32>
    %c1_25 = arith.constant 1 : index
    %76 = memref.load %arg5[%c1_25] : memref<11xf32, #tpu.memory_space<smem>>
    %77 = arith.addf %76, %75 : f32
    %c1_26 = arith.constant 1 : index
    %78 = memref.load %arg5[%c1_26] : memref<11xf32, #tpu.memory_space<smem>>
    memref.store %77, %arg5[%c1_26] : memref<11xf32, #tpu.memory_space<smem>>
    %cst_27 = arith.constant 2.000000e-01 : f32
    %79 = vector.broadcast %cst_27 : f32 to vector<16x128xf32>
    %80 = arith.cmpf oge, %32, %79 : vector<16x128xf32>
    %81 = arith.extui %80 : vector<16x128xi1> to vector<16x128xi32>
    %82 = arith.sitofp %81 : vector<16x128xi32> to vector<16x128xf32>
    %83 = vector.shape_cast %82 : vector<16x128xf32> to vector<1x16x128xf32>
    %cst_28 = arith.constant dense<0.000000e+00> : vector<1xf32>
    %84 = vector.multi_reduction <add>, %83, %cst_28 [1, 2] : vector<1x16x128xf32> to vector<1xf32>
    %85 = vector.shape_cast %84 : vector<1xf32> to vector<1x1x1xf32>
    %86 = vector.extract %85[0, 0, 0] : f32 from vector<1x1x1xf32>
    %c2 = arith.constant 2 : index
    %87 = memref.load %arg4[%c2] : memref<11xf32, #tpu.memory_space<smem>>
    %88 = arith.addf %87, %86 : f32
    %c2_29 = arith.constant 2 : index
    %89 = memref.load %arg4[%c2_29] : memref<11xf32, #tpu.memory_space<smem>>
    memref.store %88, %arg4[%c2_29] : memref<11xf32, #tpu.memory_space<smem>>
    %cst_30 = arith.constant 2.000000e+00 : f32
    %90 = vector.broadcast %cst_30 : f32 to vector<16x128xf32>
    %91 = arith.cmpf oge, %20, %90 : vector<16x128xf32>
    %cst_31 = arith.constant 0.000000e+00 : f32
    %92 = vector.broadcast %cst_31 : f32 to vector<16x128xf32>
    %93 = arith.select %91, %34, %92 : vector<16x128xi1>, vector<16x128xf32>
    %94 = vector.shape_cast %93 : vector<16x128xf32> to vector<1x16x128xf32>
    %cst_32 = arith.constant dense<0.000000e+00> : vector<1xf32>
    %95 = vector.multi_reduction <add>, %94, %cst_32 [1, 2] : vector<1x16x128xf32> to vector<1xf32>
    %96 = vector.shape_cast %95 : vector<1xf32> to vector<1x1x1xf32>
    %97 = vector.extract %96[0, 0, 0] : f32 from vector<1x1x1xf32>
    %c2_33 = arith.constant 2 : index
    %98 = memref.load %arg5[%c2_33] : memref<11xf32, #tpu.memory_space<smem>>
    %99 = arith.addf %98, %97 : f32
    %c2_34 = arith.constant 2 : index
    %100 = memref.load %arg5[%c2_34] : memref<11xf32, #tpu.memory_space<smem>>
    memref.store %99, %arg5[%c2_34] : memref<11xf32, #tpu.memory_space<smem>>
    %cst_35 = arith.constant 3.000000e-01 : f32
    %101 = vector.broadcast %cst_35 : f32 to vector<16x128xf32>
    %102 = arith.cmpf oge, %32, %101 : vector<16x128xf32>
    %103 = arith.extui %102 : vector<16x128xi1> to vector<16x128xi32>
    %104 = arith.sitofp %103 : vector<16x128xi32> to vector<16x128xf32>
    %105 = vector.shape_cast %104 : vector<16x128xf32> to vector<1x16x128xf32>
    %cst_36 = arith.constant dense<0.000000e+00> : vector<1xf32>
    %106 = vector.multi_reduction <add>, %105, %cst_36 [1, 2] : vector<1x16x128xf32> to vector<1xf32>
    %107 = vector.shape_cast %106 : vector<1xf32> to vector<1x1x1xf32>
    %108 = vector.extract %107[0, 0, 0] : f32 from vector<1x1x1xf32>
    %c3 = arith.constant 3 : index
    %109 = memref.load %arg4[%c3] : memref<11xf32, #tpu.memory_space<smem>>
    %110 = arith.addf %109, %108 : f32
    %c3_37 = arith.constant 3 : index
    %111 = memref.load %arg4[%c3_37] : memref<11xf32, #tpu.memory_space<smem>>
    memref.store %110, %arg4[%c3_37] : memref<11xf32, #tpu.memory_space<smem>>
    %cst_38 = arith.constant 3.000000e+00 : f32
    %112 = vector.broadcast %cst_38 : f32 to vector<16x128xf32>
    %113 = arith.cmpf oge, %20, %112 : vector<16x128xf32>
    %cst_39 = arith.constant 0.000000e+00 : f32
    %114 = vector.broadcast %cst_39 : f32 to vector<16x128xf32>
    %115 = arith.select %113, %34, %114 : vector<16x128xi1>, vector<16x128xf32>
    %116 = vector.shape_cast %115 : vector<16x128xf32> to vector<1x16x128xf32>
    %cst_40 = arith.constant dense<0.000000e+00> : vector<1xf32>
    %117 = vector.multi_reduction <add>, %116, %cst_40 [1, 2] : vector<1x16x128xf32> to vector<1xf32>
    %118 = vector.shape_cast %117 : vector<1xf32> to vector<1x1x1xf32>
    %119 = vector.extract %118[0, 0, 0] : f32 from vector<1x1x1xf32>
    %c3_41 = arith.constant 3 : index
    %120 = memref.load %arg5[%c3_41] : memref<11xf32, #tpu.memory_space<smem>>
    %121 = arith.addf %120, %119 : f32
    %c3_42 = arith.constant 3 : index
    %122 = memref.load %arg5[%c3_42] : memref<11xf32, #tpu.memory_space<smem>>
    memref.store %121, %arg5[%c3_42] : memref<11xf32, #tpu.memory_space<smem>>
    %cst_43 = arith.constant 4.000000e-01 : f32
    %123 = vector.broadcast %cst_43 : f32 to vector<16x128xf32>
    %124 = arith.cmpf oge, %32, %123 : vector<16x128xf32>
    %125 = arith.extui %124 : vector<16x128xi1> to vector<16x128xi32>
    %126 = arith.sitofp %125 : vector<16x128xi32> to vector<16x128xf32>
    %127 = vector.shape_cast %126 : vector<16x128xf32> to vector<1x16x128xf32>
    %cst_44 = arith.constant dense<0.000000e+00> : vector<1xf32>
    %128 = vector.multi_reduction <add>, %127, %cst_44 [1, 2] : vector<1x16x128xf32> to vector<1xf32>
    %129 = vector.shape_cast %128 : vector<1xf32> to vector<1x1x1xf32>
    %130 = vector.extract %129[0, 0, 0] : f32 from vector<1x1x1xf32>
    %c4 = arith.constant 4 : index
    %131 = memref.load %arg4[%c4] : memref<11xf32, #tpu.memory_space<smem>>
    %132 = arith.addf %131, %130 : f32
    %c4_45 = arith.constant 4 : index
    %133 = memref.load %arg4[%c4_45] : memref<11xf32, #tpu.memory_space<smem>>
    memref.store %132, %arg4[%c4_45] : memref<11xf32, #tpu.memory_space<smem>>
    %cst_46 = arith.constant 4.000000e+00 : f32
    %134 = vector.broadcast %cst_46 : f32 to vector<16x128xf32>
    %135 = arith.cmpf oge, %20, %134 : vector<16x128xf32>
    %cst_47 = arith.constant 0.000000e+00 : f32
    %136 = vector.broadcast %cst_47 : f32 to vector<16x128xf32>
    %137 = arith.select %135, %34, %136 : vector<16x128xi1>, vector<16x128xf32>
    %138 = vector.shape_cast %137 : vector<16x128xf32> to vector<1x16x128xf32>
    %cst_48 = arith.constant dense<0.000000e+00> : vector<1xf32>
    %139 = vector.multi_reduction <add>, %138, %cst_48 [1, 2] : vector<1x16x128xf32> to vector<1xf32>
    %140 = vector.shape_cast %139 : vector<1xf32> to vector<1x1x1xf32>
    %141 = vector.extract %140[0, 0, 0] : f32 from vector<1x1x1xf32>
    %c4_49 = arith.constant 4 : index
    %142 = memref.load %arg5[%c4_49] : memref<11xf32, #tpu.memory_space<smem>>
    %143 = arith.addf %142, %141 : f32
    %c4_50 = arith.constant 4 : index
    %144 = memref.load %arg5[%c4_50] : memref<11xf32, #tpu.memory_space<smem>>
    memref.store %143, %arg5[%c4_50] : memref<11xf32, #tpu.memory_space<smem>>
    %cst_51 = arith.constant 5.000000e-01 : f32
    %145 = vector.broadcast %cst_51 : f32 to vector<16x128xf32>
    %146 = arith.cmpf oge, %32, %145 : vector<16x128xf32>
    %147 = arith.extui %146 : vector<16x128xi1> to vector<16x128xi32>
    %148 = arith.sitofp %147 : vector<16x128xi32> to vector<16x128xf32>
    %149 = vector.shape_cast %148 : vector<16x128xf32> to vector<1x16x128xf32>
    %cst_52 = arith.constant dense<0.000000e+00> : vector<1xf32>
    %150 = vector.multi_reduction <add>, %149, %cst_52 [1, 2] : vector<1x16x128xf32> to vector<1xf32>
    %151 = vector.shape_cast %150 : vector<1xf32> to vector<1x1x1xf32>
    %152 = vector.extract %151[0, 0, 0] : f32 from vector<1x1x1xf32>
    %c5 = arith.constant 5 : index
    %153 = memref.load %arg4[%c5] : memref<11xf32, #tpu.memory_space<smem>>
    %154 = arith.addf %153, %152 : f32
    %c5_53 = arith.constant 5 : index
    %155 = memref.load %arg4[%c5_53] : memref<11xf32, #tpu.memory_space<smem>>
    memref.store %154, %arg4[%c5_53] : memref<11xf32, #tpu.memory_space<smem>>
    %cst_54 = arith.constant 5.000000e+00 : f32
    %156 = vector.broadcast %cst_54 : f32 to vector<16x128xf32>
    %157 = arith.cmpf oge, %20, %156 : vector<16x128xf32>
    %cst_55 = arith.constant 0.000000e+00 : f32
    %158 = vector.broadcast %cst_55 : f32 to vector<16x128xf32>
    %159 = arith.select %157, %34, %158 : vector<16x128xi1>, vector<16x128xf32>
    %160 = vector.shape_cast %159 : vector<16x128xf32> to vector<1x16x128xf32>
    %cst_56 = arith.constant dense<0.000000e+00> : vector<1xf32>
    %161 = vector.multi_reduction <add>, %160, %cst_56 [1, 2] : vector<1x16x128xf32> to vector<1xf32>
    %162 = vector.shape_cast %161 : vector<1xf32> to vector<1x1x1xf32>
    %163 = vector.extract %162[0, 0, 0] : f32 from vector<1x1x1xf32>
    %c5_57 = arith.constant 5 : index
    %164 = memref.load %arg5[%c5_57] : memref<11xf32, #tpu.memory_space<smem>>
    %165 = arith.addf %164, %163 : f32
    %c5_58 = arith.constant 5 : index
    %166 = memref.load %arg5[%c5_58] : memref<11xf32, #tpu.memory_space<smem>>
    memref.store %165, %arg5[%c5_58] : memref<11xf32, #tpu.memory_space<smem>>
    %cst_59 = arith.constant 6.000000e-01 : f32
    %167 = vector.broadcast %cst_59 : f32 to vector<16x128xf32>
    %168 = arith.cmpf oge, %32, %167 : vector<16x128xf32>
    %169 = arith.extui %168 : vector<16x128xi1> to vector<16x128xi32>
    %170 = arith.sitofp %169 : vector<16x128xi32> to vector<16x128xf32>
    %171 = vector.shape_cast %170 : vector<16x128xf32> to vector<1x16x128xf32>
    %cst_60 = arith.constant dense<0.000000e+00> : vector<1xf32>
    %172 = vector.multi_reduction <add>, %171, %cst_60 [1, 2] : vector<1x16x128xf32> to vector<1xf32>
    %173 = vector.shape_cast %172 : vector<1xf32> to vector<1x1x1xf32>
    %174 = vector.extract %173[0, 0, 0] : f32 from vector<1x1x1xf32>
    %c6 = arith.constant 6 : index
    %175 = memref.load %arg4[%c6] : memref<11xf32, #tpu.memory_space<smem>>
    %176 = arith.addf %175, %174 : f32
    %c6_61 = arith.constant 6 : index
    %177 = memref.load %arg4[%c6_61] : memref<11xf32, #tpu.memory_space<smem>>
    memref.store %176, %arg4[%c6_61] : memref<11xf32, #tpu.memory_space<smem>>
    %cst_62 = arith.constant 6.000000e+00 : f32
    %178 = vector.broadcast %cst_62 : f32 to vector<16x128xf32>
    %179 = arith.cmpf oge, %20, %178 : vector<16x128xf32>
    %cst_63 = arith.constant 0.000000e+00 : f32
    %180 = vector.broadcast %cst_63 : f32 to vector<16x128xf32>
    %181 = arith.select %179, %34, %180 : vector<16x128xi1>, vector<16x128xf32>
    %182 = vector.shape_cast %181 : vector<16x128xf32> to vector<1x16x128xf32>
    %cst_64 = arith.constant dense<0.000000e+00> : vector<1xf32>
    %183 = vector.multi_reduction <add>, %182, %cst_64 [1, 2] : vector<1x16x128xf32> to vector<1xf32>
    %184 = vector.shape_cast %183 : vector<1xf32> to vector<1x1x1xf32>
    %185 = vector.extract %184[0, 0, 0] : f32 from vector<1x1x1xf32>
    %c6_65 = arith.constant 6 : index
    %186 = memref.load %arg5[%c6_65] : memref<11xf32, #tpu.memory_space<smem>>
    %187 = arith.addf %186, %185 : f32
    %c6_66 = arith.constant 6 : index
    %188 = memref.load %arg5[%c6_66] : memref<11xf32, #tpu.memory_space<smem>>
    memref.store %187, %arg5[%c6_66] : memref<11xf32, #tpu.memory_space<smem>>
    %cst_67 = arith.constant 0.699999988 : f32
    %189 = vector.broadcast %cst_67 : f32 to vector<16x128xf32>
    %190 = arith.cmpf oge, %32, %189 : vector<16x128xf32>
    %191 = arith.extui %190 : vector<16x128xi1> to vector<16x128xi32>
    %192 = arith.sitofp %191 : vector<16x128xi32> to vector<16x128xf32>
    %193 = vector.shape_cast %192 : vector<16x128xf32> to vector<1x16x128xf32>
    %cst_68 = arith.constant dense<0.000000e+00> : vector<1xf32>
    %194 = vector.multi_reduction <add>, %193, %cst_68 [1, 2] : vector<1x16x128xf32> to vector<1xf32>
    %195 = vector.shape_cast %194 : vector<1xf32> to vector<1x1x1xf32>
    %196 = vector.extract %195[0, 0, 0] : f32 from vector<1x1x1xf32>
    %c7 = arith.constant 7 : index
    %197 = memref.load %arg4[%c7] : memref<11xf32, #tpu.memory_space<smem>>
    %198 = arith.addf %197, %196 : f32
    %c7_69 = arith.constant 7 : index
    %199 = memref.load %arg4[%c7_69] : memref<11xf32, #tpu.memory_space<smem>>
    memref.store %198, %arg4[%c7_69] : memref<11xf32, #tpu.memory_space<smem>>
    %cst_70 = arith.constant 7.000000e+00 : f32
    %200 = vector.broadcast %cst_70 : f32 to vector<16x128xf32>
    %201 = arith.cmpf oge, %20, %200 : vector<16x128xf32>
    %cst_71 = arith.constant 0.000000e+00 : f32
    %202 = vector.broadcast %cst_71 : f32 to vector<16x128xf32>
    %203 = arith.select %201, %34, %202 : vector<16x128xi1>, vector<16x128xf32>
    %204 = vector.shape_cast %203 : vector<16x128xf32> to vector<1x16x128xf32>
    %cst_72 = arith.constant dense<0.000000e+00> : vector<1xf32>
    %205 = vector.multi_reduction <add>, %204, %cst_72 [1, 2] : vector<1x16x128xf32> to vector<1xf32>
    %206 = vector.shape_cast %205 : vector<1xf32> to vector<1x1x1xf32>
    %207 = vector.extract %206[0, 0, 0] : f32 from vector<1x1x1xf32>
    %c7_73 = arith.constant 7 : index
    %208 = memref.load %arg5[%c7_73] : memref<11xf32, #tpu.memory_space<smem>>
    %209 = arith.addf %208, %207 : f32
    %c7_74 = arith.constant 7 : index
    %210 = memref.load %arg5[%c7_74] : memref<11xf32, #tpu.memory_space<smem>>
    memref.store %209, %arg5[%c7_74] : memref<11xf32, #tpu.memory_space<smem>>
    %cst_75 = arith.constant 8.000000e-01 : f32
    %211 = vector.broadcast %cst_75 : f32 to vector<16x128xf32>
    %212 = arith.cmpf oge, %32, %211 : vector<16x128xf32>
    %213 = arith.extui %212 : vector<16x128xi1> to vector<16x128xi32>
    %214 = arith.sitofp %213 : vector<16x128xi32> to vector<16x128xf32>
    %215 = vector.shape_cast %214 : vector<16x128xf32> to vector<1x16x128xf32>
    %cst_76 = arith.constant dense<0.000000e+00> : vector<1xf32>
    %216 = vector.multi_reduction <add>, %215, %cst_76 [1, 2] : vector<1x16x128xf32> to vector<1xf32>
    %217 = vector.shape_cast %216 : vector<1xf32> to vector<1x1x1xf32>
    %218 = vector.extract %217[0, 0, 0] : f32 from vector<1x1x1xf32>
    %c8 = arith.constant 8 : index
    %219 = memref.load %arg4[%c8] : memref<11xf32, #tpu.memory_space<smem>>
    %220 = arith.addf %219, %218 : f32
    %c8_77 = arith.constant 8 : index
    %221 = memref.load %arg4[%c8_77] : memref<11xf32, #tpu.memory_space<smem>>
    memref.store %220, %arg4[%c8_77] : memref<11xf32, #tpu.memory_space<smem>>
    %cst_78 = arith.constant 8.000000e+00 : f32
    %222 = vector.broadcast %cst_78 : f32 to vector<16x128xf32>
    %223 = arith.cmpf oge, %20, %222 : vector<16x128xf32>
    %cst_79 = arith.constant 0.000000e+00 : f32
    %224 = vector.broadcast %cst_79 : f32 to vector<16x128xf32>
    %225 = arith.select %223, %34, %224 : vector<16x128xi1>, vector<16x128xf32>
    %226 = vector.shape_cast %225 : vector<16x128xf32> to vector<1x16x128xf32>
    %cst_80 = arith.constant dense<0.000000e+00> : vector<1xf32>
    %227 = vector.multi_reduction <add>, %226, %cst_80 [1, 2] : vector<1x16x128xf32> to vector<1xf32>
    %228 = vector.shape_cast %227 : vector<1xf32> to vector<1x1x1xf32>
    %229 = vector.extract %228[0, 0, 0] : f32 from vector<1x1x1xf32>
    %c8_81 = arith.constant 8 : index
    %230 = memref.load %arg5[%c8_81] : memref<11xf32, #tpu.memory_space<smem>>
    %231 = arith.addf %230, %229 : f32
    %c8_82 = arith.constant 8 : index
    %232 = memref.load %arg5[%c8_82] : memref<11xf32, #tpu.memory_space<smem>>
    memref.store %231, %arg5[%c8_82] : memref<11xf32, #tpu.memory_space<smem>>
    %cst_83 = arith.constant 0.899999976 : f32
    %233 = vector.broadcast %cst_83 : f32 to vector<16x128xf32>
    %234 = arith.cmpf oge, %32, %233 : vector<16x128xf32>
    %235 = arith.extui %234 : vector<16x128xi1> to vector<16x128xi32>
    %236 = arith.sitofp %235 : vector<16x128xi32> to vector<16x128xf32>
    %237 = vector.shape_cast %236 : vector<16x128xf32> to vector<1x16x128xf32>
    %cst_84 = arith.constant dense<0.000000e+00> : vector<1xf32>
    %238 = vector.multi_reduction <add>, %237, %cst_84 [1, 2] : vector<1x16x128xf32> to vector<1xf32>
    %239 = vector.shape_cast %238 : vector<1xf32> to vector<1x1x1xf32>
    %240 = vector.extract %239[0, 0, 0] : f32 from vector<1x1x1xf32>
    %c9 = arith.constant 9 : index
    %241 = memref.load %arg4[%c9] : memref<11xf32, #tpu.memory_space<smem>>
    %242 = arith.addf %241, %240 : f32
    %c9_85 = arith.constant 9 : index
    %243 = memref.load %arg4[%c9_85] : memref<11xf32, #tpu.memory_space<smem>>
    memref.store %242, %arg4[%c9_85] : memref<11xf32, #tpu.memory_space<smem>>
    %cst_86 = arith.constant 9.000000e+00 : f32
    %244 = vector.broadcast %cst_86 : f32 to vector<16x128xf32>
    %245 = arith.cmpf oge, %20, %244 : vector<16x128xf32>
    %cst_87 = arith.constant 0.000000e+00 : f32
    %246 = vector.broadcast %cst_87 : f32 to vector<16x128xf32>
    %247 = arith.select %245, %34, %246 : vector<16x128xi1>, vector<16x128xf32>
    %248 = vector.shape_cast %247 : vector<16x128xf32> to vector<1x16x128xf32>
    %cst_88 = arith.constant dense<0.000000e+00> : vector<1xf32>
    %249 = vector.multi_reduction <add>, %248, %cst_88 [1, 2] : vector<1x16x128xf32> to vector<1xf32>
    %250 = vector.shape_cast %249 : vector<1xf32> to vector<1x1x1xf32>
    %251 = vector.extract %250[0, 0, 0] : f32 from vector<1x1x1xf32>
    %c9_89 = arith.constant 9 : index
    %252 = memref.load %arg5[%c9_89] : memref<11xf32, #tpu.memory_space<smem>>
    %253 = arith.addf %252, %251 : f32
    %c9_90 = arith.constant 9 : index
    %254 = memref.load %arg5[%c9_90] : memref<11xf32, #tpu.memory_space<smem>>
    memref.store %253, %arg5[%c9_90] : memref<11xf32, #tpu.memory_space<smem>>
    %cst_91 = arith.constant 1.000000e+00 : f32
    %255 = vector.broadcast %cst_91 : f32 to vector<16x128xf32>
    %256 = arith.cmpf oge, %32, %255 : vector<16x128xf32>
    %257 = arith.extui %256 : vector<16x128xi1> to vector<16x128xi32>
    %258 = arith.sitofp %257 : vector<16x128xi32> to vector<16x128xf32>
    %259 = vector.shape_cast %258 : vector<16x128xf32> to vector<1x16x128xf32>
    %cst_92 = arith.constant dense<0.000000e+00> : vector<1xf32>
    %260 = vector.multi_reduction <add>, %259, %cst_92 [1, 2] : vector<1x16x128xf32> to vector<1xf32>
    %261 = vector.shape_cast %260 : vector<1xf32> to vector<1x1x1xf32>
    %262 = vector.extract %261[0, 0, 0] : f32 from vector<1x1x1xf32>
    %c10 = arith.constant 10 : index
    %263 = memref.load %arg4[%c10] : memref<11xf32, #tpu.memory_space<smem>>
    %264 = arith.addf %263, %262 : f32
    %c10_93 = arith.constant 10 : index
    %265 = memref.load %arg4[%c10_93] : memref<11xf32, #tpu.memory_space<smem>>
    memref.store %264, %arg4[%c10_93] : memref<11xf32, #tpu.memory_space<smem>>
    %c0_i32_94 = arith.constant 0 : i32
    %266 = arith.cmpi eq, %arg0, %c0_i32_94 : i32
    %267 = arith.extui %266 : i1 to i32
    %c0_i32_95 = arith.constant 0 : i32
    %268 = arith.cmpi ne, %267, %c0_i32_95 : i32
    scf.if %268 {
      %269 = tpu.iota {dimensions = array<i32: 1>} : vector<1x128xi32>
      %cst_96 = arith.constant 0.000000e+00 : f32
      %270 = vector.broadcast %cst_96 : f32 to vector<1x128xf32>
      %c0_i32_97 = arith.constant 0 : i32
      %271 = vector.broadcast %c0_i32_97 : i32 to vector<1x128xi32>
      %272 = arith.cmpi eq, %269, %271 : vector<1x128xi32>
      %c0_98 = arith.constant 0 : index
      %273 = memref.load %arg4[%c0_98] : memref<11xf32, #tpu.memory_space<smem>>
      %274 = vector.broadcast %273 : f32 to vector<1x128xf32>
      %275 = arith.select %272, %274, %270 : vector<1x128xi1>, vector<1x128xf32>
      %c0_i32_99 = arith.constant 0 : i32
      %276 = vector.broadcast %c0_i32_99 : i32 to vector<1x128xi32>
      %277 = arith.cmpi eq, %269, %276 : vector<1x128xi32>
      %c1_100 = arith.constant 1 : index
      %278 = memref.load %arg4[%c1_100] : memref<11xf32, #tpu.memory_space<smem>>
      %279 = vector.broadcast %278 : f32 to vector<1x128xf32>
      %280 = arith.select %277, %279, %270 : vector<1x128xi1>, vector<1x128xf32>
      %c0_i32_101 = arith.constant 0 : i32
      %281 = vector.broadcast %c0_i32_101 : i32 to vector<1x128xi32>
      %282 = arith.cmpi eq, %269, %281 : vector<1x128xi32>
      %c0_102 = arith.constant 0 : index
      %283 = memref.load %arg5[%c0_102] : memref<11xf32, #tpu.memory_space<smem>>
      %284 = vector.broadcast %283 : f32 to vector<1x128xf32>
      %285 = arith.select %282, %284, %270 : vector<1x128xi1>, vector<1x128xf32>
      %c0_i32_103 = arith.constant 0 : i32
      %286 = vector.broadcast %c0_i32_103 : i32 to vector<1x128xi32>
      %287 = arith.cmpi eq, %269, %286 : vector<1x128xi32>
      %c1_104 = arith.constant 1 : index
      %288 = memref.load %arg5[%c1_104] : memref<11xf32, #tpu.memory_space<smem>>
      %289 = vector.broadcast %288 : f32 to vector<1x128xf32>
      %290 = arith.select %287, %289, %270 : vector<1x128xi1>, vector<1x128xf32>
      %c1_i32 = arith.constant 1 : i32
      %291 = vector.broadcast %c1_i32 : i32 to vector<1x128xi32>
      %292 = arith.cmpi eq, %269, %291 : vector<1x128xi32>
      %c1_105 = arith.constant 1 : index
      %293 = memref.load %arg4[%c1_105] : memref<11xf32, #tpu.memory_space<smem>>
      %294 = vector.broadcast %293 : f32 to vector<1x128xf32>
      %295 = arith.select %292, %294, %275 : vector<1x128xi1>, vector<1x128xf32>
      %c1_i32_106 = arith.constant 1 : i32
      %296 = vector.broadcast %c1_i32_106 : i32 to vector<1x128xi32>
      %297 = arith.cmpi eq, %269, %296 : vector<1x128xi32>
      %c2_107 = arith.constant 2 : index
      %298 = memref.load %arg4[%c2_107] : memref<11xf32, #tpu.memory_space<smem>>
      %299 = vector.broadcast %298 : f32 to vector<1x128xf32>
      %300 = arith.select %297, %299, %280 : vector<1x128xi1>, vector<1x128xf32>
      %c1_i32_108 = arith.constant 1 : i32
      %301 = vector.broadcast %c1_i32_108 : i32 to vector<1x128xi32>
      %302 = arith.cmpi eq, %269, %301 : vector<1x128xi32>
      %c1_109 = arith.constant 1 : index
      %303 = memref.load %arg5[%c1_109] : memref<11xf32, #tpu.memory_space<smem>>
      %304 = vector.broadcast %303 : f32 to vector<1x128xf32>
      %305 = arith.select %302, %304, %285 : vector<1x128xi1>, vector<1x128xf32>
      %c1_i32_110 = arith.constant 1 : i32
      %306 = vector.broadcast %c1_i32_110 : i32 to vector<1x128xi32>
      %307 = arith.cmpi eq, %269, %306 : vector<1x128xi32>
      %c2_111 = arith.constant 2 : index
      %308 = memref.load %arg5[%c2_111] : memref<11xf32, #tpu.memory_space<smem>>
      %309 = vector.broadcast %308 : f32 to vector<1x128xf32>
      %310 = arith.select %307, %309, %290 : vector<1x128xi1>, vector<1x128xf32>
      %c2_i32 = arith.constant 2 : i32
      %311 = vector.broadcast %c2_i32 : i32 to vector<1x128xi32>
      %312 = arith.cmpi eq, %269, %311 : vector<1x128xi32>
      %c2_112 = arith.constant 2 : index
      %313 = memref.load %arg4[%c2_112] : memref<11xf32, #tpu.memory_space<smem>>
      %314 = vector.broadcast %313 : f32 to vector<1x128xf32>
      %315 = arith.select %312, %314, %295 : vector<1x128xi1>, vector<1x128xf32>
      %c2_i32_113 = arith.constant 2 : i32
      %316 = vector.broadcast %c2_i32_113 : i32 to vector<1x128xi32>
      %317 = arith.cmpi eq, %269, %316 : vector<1x128xi32>
      %c3_114 = arith.constant 3 : index
      %318 = memref.load %arg4[%c3_114] : memref<11xf32, #tpu.memory_space<smem>>
      %319 = vector.broadcast %318 : f32 to vector<1x128xf32>
      %320 = arith.select %317, %319, %300 : vector<1x128xi1>, vector<1x128xf32>
      %c2_i32_115 = arith.constant 2 : i32
      %321 = vector.broadcast %c2_i32_115 : i32 to vector<1x128xi32>
      %322 = arith.cmpi eq, %269, %321 : vector<1x128xi32>
      %c2_116 = arith.constant 2 : index
      %323 = memref.load %arg5[%c2_116] : memref<11xf32, #tpu.memory_space<smem>>
      %324 = vector.broadcast %323 : f32 to vector<1x128xf32>
      %325 = arith.select %322, %324, %305 : vector<1x128xi1>, vector<1x128xf32>
      %c2_i32_117 = arith.constant 2 : i32
      %326 = vector.broadcast %c2_i32_117 : i32 to vector<1x128xi32>
      %327 = arith.cmpi eq, %269, %326 : vector<1x128xi32>
      %c3_118 = arith.constant 3 : index
      %328 = memref.load %arg5[%c3_118] : memref<11xf32, #tpu.memory_space<smem>>
      %329 = vector.broadcast %328 : f32 to vector<1x128xf32>
      %330 = arith.select %327, %329, %310 : vector<1x128xi1>, vector<1x128xf32>
      %c3_i32 = arith.constant 3 : i32
      %331 = vector.broadcast %c3_i32 : i32 to vector<1x128xi32>
      %332 = arith.cmpi eq, %269, %331 : vector<1x128xi32>
      %c3_119 = arith.constant 3 : index
      %333 = memref.load %arg4[%c3_119] : memref<11xf32, #tpu.memory_space<smem>>
      %334 = vector.broadcast %333 : f32 to vector<1x128xf32>
      %335 = arith.select %332, %334, %315 : vector<1x128xi1>, vector<1x128xf32>
      %c3_i32_120 = arith.constant 3 : i32
      %336 = vector.broadcast %c3_i32_120 : i32 to vector<1x128xi32>
      %337 = arith.cmpi eq, %269, %336 : vector<1x128xi32>
      %c4_121 = arith.constant 4 : index
      %338 = memref.load %arg4[%c4_121] : memref<11xf32, #tpu.memory_space<smem>>
      %339 = vector.broadcast %338 : f32 to vector<1x128xf32>
      %340 = arith.select %337, %339, %320 : vector<1x128xi1>, vector<1x128xf32>
      %c3_i32_122 = arith.constant 3 : i32
      %341 = vector.broadcast %c3_i32_122 : i32 to vector<1x128xi32>
      %342 = arith.cmpi eq, %269, %341 : vector<1x128xi32>
      %c3_123 = arith.constant 3 : index
      %343 = memref.load %arg5[%c3_123] : memref<11xf32, #tpu.memory_space<smem>>
      %344 = vector.broadcast %343 : f32 to vector<1x128xf32>
      %345 = arith.select %342, %344, %325 : vector<1x128xi1>, vector<1x128xf32>
      %c3_i32_124 = arith.constant 3 : i32
      %346 = vector.broadcast %c3_i32_124 : i32 to vector<1x128xi32>
      %347 = arith.cmpi eq, %269, %346 : vector<1x128xi32>
      %c4_125 = arith.constant 4 : index
      %348 = memref.load %arg5[%c4_125] : memref<11xf32, #tpu.memory_space<smem>>
      %349 = vector.broadcast %348 : f32 to vector<1x128xf32>
      %350 = arith.select %347, %349, %330 : vector<1x128xi1>, vector<1x128xf32>
      %c4_i32 = arith.constant 4 : i32
      %351 = vector.broadcast %c4_i32 : i32 to vector<1x128xi32>
      %352 = arith.cmpi eq, %269, %351 : vector<1x128xi32>
      %c4_126 = arith.constant 4 : index
      %353 = memref.load %arg4[%c4_126] : memref<11xf32, #tpu.memory_space<smem>>
      %354 = vector.broadcast %353 : f32 to vector<1x128xf32>
      %355 = arith.select %352, %354, %335 : vector<1x128xi1>, vector<1x128xf32>
      %c4_i32_127 = arith.constant 4 : i32
      %356 = vector.broadcast %c4_i32_127 : i32 to vector<1x128xi32>
      %357 = arith.cmpi eq, %269, %356 : vector<1x128xi32>
      %c5_128 = arith.constant 5 : index
      %358 = memref.load %arg4[%c5_128] : memref<11xf32, #tpu.memory_space<smem>>
      %359 = vector.broadcast %358 : f32 to vector<1x128xf32>
      %360 = arith.select %357, %359, %340 : vector<1x128xi1>, vector<1x128xf32>
      %c4_i32_129 = arith.constant 4 : i32
      %361 = vector.broadcast %c4_i32_129 : i32 to vector<1x128xi32>
      %362 = arith.cmpi eq, %269, %361 : vector<1x128xi32>
      %c4_130 = arith.constant 4 : index
      %363 = memref.load %arg5[%c4_130] : memref<11xf32, #tpu.memory_space<smem>>
      %364 = vector.broadcast %363 : f32 to vector<1x128xf32>
      %365 = arith.select %362, %364, %345 : vector<1x128xi1>, vector<1x128xf32>
      %c4_i32_131 = arith.constant 4 : i32
      %366 = vector.broadcast %c4_i32_131 : i32 to vector<1x128xi32>
      %367 = arith.cmpi eq, %269, %366 : vector<1x128xi32>
      %c5_132 = arith.constant 5 : index
      %368 = memref.load %arg5[%c5_132] : memref<11xf32, #tpu.memory_space<smem>>
      %369 = vector.broadcast %368 : f32 to vector<1x128xf32>
      %370 = arith.select %367, %369, %350 : vector<1x128xi1>, vector<1x128xf32>
      %c5_i32 = arith.constant 5 : i32
      %371 = vector.broadcast %c5_i32 : i32 to vector<1x128xi32>
      %372 = arith.cmpi eq, %269, %371 : vector<1x128xi32>
      %c5_133 = arith.constant 5 : index
      %373 = memref.load %arg4[%c5_133] : memref<11xf32, #tpu.memory_space<smem>>
      %374 = vector.broadcast %373 : f32 to vector<1x128xf32>
      %375 = arith.select %372, %374, %355 : vector<1x128xi1>, vector<1x128xf32>
      %c5_i32_134 = arith.constant 5 : i32
      %376 = vector.broadcast %c5_i32_134 : i32 to vector<1x128xi32>
      %377 = arith.cmpi eq, %269, %376 : vector<1x128xi32>
      %c6_135 = arith.constant 6 : index
      %378 = memref.load %arg4[%c6_135] : memref<11xf32, #tpu.memory_space<smem>>
      %379 = vector.broadcast %378 : f32 to vector<1x128xf32>
      %380 = arith.select %377, %379, %360 : vector<1x128xi1>, vector<1x128xf32>
      %c5_i32_136 = arith.constant 5 : i32
      %381 = vector.broadcast %c5_i32_136 : i32 to vector<1x128xi32>
      %382 = arith.cmpi eq, %269, %381 : vector<1x128xi32>
      %c5_137 = arith.constant 5 : index
      %383 = memref.load %arg5[%c5_137] : memref<11xf32, #tpu.memory_space<smem>>
      %384 = vector.broadcast %383 : f32 to vector<1x128xf32>
      %385 = arith.select %382, %384, %365 : vector<1x128xi1>, vector<1x128xf32>
      %c5_i32_138 = arith.constant 5 : i32
      %386 = vector.broadcast %c5_i32_138 : i32 to vector<1x128xi32>
      %387 = arith.cmpi eq, %269, %386 : vector<1x128xi32>
      %c6_139 = arith.constant 6 : index
      %388 = memref.load %arg5[%c6_139] : memref<11xf32, #tpu.memory_space<smem>>
      %389 = vector.broadcast %388 : f32 to vector<1x128xf32>
      %390 = arith.select %387, %389, %370 : vector<1x128xi1>, vector<1x128xf32>
      %c6_i32 = arith.constant 6 : i32
      %391 = vector.broadcast %c6_i32 : i32 to vector<1x128xi32>
      %392 = arith.cmpi eq, %269, %391 : vector<1x128xi32>
      %c6_140 = arith.constant 6 : index
      %393 = memref.load %arg4[%c6_140] : memref<11xf32, #tpu.memory_space<smem>>
      %394 = vector.broadcast %393 : f32 to vector<1x128xf32>
      %395 = arith.select %392, %394, %375 : vector<1x128xi1>, vector<1x128xf32>
      %c6_i32_141 = arith.constant 6 : i32
      %396 = vector.broadcast %c6_i32_141 : i32 to vector<1x128xi32>
      %397 = arith.cmpi eq, %269, %396 : vector<1x128xi32>
      %c7_142 = arith.constant 7 : index
      %398 = memref.load %arg4[%c7_142] : memref<11xf32, #tpu.memory_space<smem>>
      %399 = vector.broadcast %398 : f32 to vector<1x128xf32>
      %400 = arith.select %397, %399, %380 : vector<1x128xi1>, vector<1x128xf32>
      %c6_i32_143 = arith.constant 6 : i32
      %401 = vector.broadcast %c6_i32_143 : i32 to vector<1x128xi32>
      %402 = arith.cmpi eq, %269, %401 : vector<1x128xi32>
      %c6_144 = arith.constant 6 : index
      %403 = memref.load %arg5[%c6_144] : memref<11xf32, #tpu.memory_space<smem>>
      %404 = vector.broadcast %403 : f32 to vector<1x128xf32>
      %405 = arith.select %402, %404, %385 : vector<1x128xi1>, vector<1x128xf32>
      %c6_i32_145 = arith.constant 6 : i32
      %406 = vector.broadcast %c6_i32_145 : i32 to vector<1x128xi32>
      %407 = arith.cmpi eq, %269, %406 : vector<1x128xi32>
      %c7_146 = arith.constant 7 : index
      %408 = memref.load %arg5[%c7_146] : memref<11xf32, #tpu.memory_space<smem>>
      %409 = vector.broadcast %408 : f32 to vector<1x128xf32>
      %410 = arith.select %407, %409, %390 : vector<1x128xi1>, vector<1x128xf32>
      %c7_i32 = arith.constant 7 : i32
      %411 = vector.broadcast %c7_i32 : i32 to vector<1x128xi32>
      %412 = arith.cmpi eq, %269, %411 : vector<1x128xi32>
      %c7_147 = arith.constant 7 : index
      %413 = memref.load %arg4[%c7_147] : memref<11xf32, #tpu.memory_space<smem>>
      %414 = vector.broadcast %413 : f32 to vector<1x128xf32>
      %415 = arith.select %412, %414, %395 : vector<1x128xi1>, vector<1x128xf32>
      %c7_i32_148 = arith.constant 7 : i32
      %416 = vector.broadcast %c7_i32_148 : i32 to vector<1x128xi32>
      %417 = arith.cmpi eq, %269, %416 : vector<1x128xi32>
      %c8_149 = arith.constant 8 : index
      %418 = memref.load %arg4[%c8_149] : memref<11xf32, #tpu.memory_space<smem>>
      %419 = vector.broadcast %418 : f32 to vector<1x128xf32>
      %420 = arith.select %417, %419, %400 : vector<1x128xi1>, vector<1x128xf32>
      %c7_i32_150 = arith.constant 7 : i32
      %421 = vector.broadcast %c7_i32_150 : i32 to vector<1x128xi32>
      %422 = arith.cmpi eq, %269, %421 : vector<1x128xi32>
      %c7_151 = arith.constant 7 : index
      %423 = memref.load %arg5[%c7_151] : memref<11xf32, #tpu.memory_space<smem>>
      %424 = vector.broadcast %423 : f32 to vector<1x128xf32>
      %425 = arith.select %422, %424, %405 : vector<1x128xi1>, vector<1x128xf32>
      %c7_i32_152 = arith.constant 7 : i32
      %426 = vector.broadcast %c7_i32_152 : i32 to vector<1x128xi32>
      %427 = arith.cmpi eq, %269, %426 : vector<1x128xi32>
      %c8_153 = arith.constant 8 : index
      %428 = memref.load %arg5[%c8_153] : memref<11xf32, #tpu.memory_space<smem>>
      %429 = vector.broadcast %428 : f32 to vector<1x128xf32>
      %430 = arith.select %427, %429, %410 : vector<1x128xi1>, vector<1x128xf32>
      %c8_i32 = arith.constant 8 : i32
      %431 = vector.broadcast %c8_i32 : i32 to vector<1x128xi32>
      %432 = arith.cmpi eq, %269, %431 : vector<1x128xi32>
      %c8_154 = arith.constant 8 : index
      %433 = memref.load %arg4[%c8_154] : memref<11xf32, #tpu.memory_space<smem>>
      %434 = vector.broadcast %433 : f32 to vector<1x128xf32>
      %435 = arith.select %432, %434, %415 : vector<1x128xi1>, vector<1x128xf32>
      %c8_i32_155 = arith.constant 8 : i32
      %436 = vector.broadcast %c8_i32_155 : i32 to vector<1x128xi32>
      %437 = arith.cmpi eq, %269, %436 : vector<1x128xi32>
      %c9_156 = arith.constant 9 : index
      %438 = memref.load %arg4[%c9_156] : memref<11xf32, #tpu.memory_space<smem>>
      %439 = vector.broadcast %438 : f32 to vector<1x128xf32>
      %440 = arith.select %437, %439, %420 : vector<1x128xi1>, vector<1x128xf32>
      %c8_i32_157 = arith.constant 8 : i32
      %441 = vector.broadcast %c8_i32_157 : i32 to vector<1x128xi32>
      %442 = arith.cmpi eq, %269, %441 : vector<1x128xi32>
      %c8_158 = arith.constant 8 : index
      %443 = memref.load %arg5[%c8_158] : memref<11xf32, #tpu.memory_space<smem>>
      %444 = vector.broadcast %443 : f32 to vector<1x128xf32>
      %445 = arith.select %442, %444, %425 : vector<1x128xi1>, vector<1x128xf32>
      %c8_i32_159 = arith.constant 8 : i32
      %446 = vector.broadcast %c8_i32_159 : i32 to vector<1x128xi32>
      %447 = arith.cmpi eq, %269, %446 : vector<1x128xi32>
      %c9_160 = arith.constant 9 : index
      %448 = memref.load %arg5[%c9_160] : memref<11xf32, #tpu.memory_space<smem>>
      %449 = vector.broadcast %448 : f32 to vector<1x128xf32>
      %450 = arith.select %447, %449, %430 : vector<1x128xi1>, vector<1x128xf32>
      %c9_i32 = arith.constant 9 : i32
      %451 = vector.broadcast %c9_i32 : i32 to vector<1x128xi32>
      %452 = arith.cmpi eq, %269, %451 : vector<1x128xi32>
      %c9_161 = arith.constant 9 : index
      %453 = memref.load %arg4[%c9_161] : memref<11xf32, #tpu.memory_space<smem>>
      %454 = vector.broadcast %453 : f32 to vector<1x128xf32>
      %455 = arith.select %452, %454, %435 : vector<1x128xi1>, vector<1x128xf32>
      %c9_i32_162 = arith.constant 9 : i32
      %456 = vector.broadcast %c9_i32_162 : i32 to vector<1x128xi32>
      %457 = arith.cmpi eq, %269, %456 : vector<1x128xi32>
      %c10_163 = arith.constant 10 : index
      %458 = memref.load %arg4[%c10_163] : memref<11xf32, #tpu.memory_space<smem>>
      %459 = vector.broadcast %458 : f32 to vector<1x128xf32>
      %460 = arith.select %457, %459, %440 : vector<1x128xi1>, vector<1x128xf32>
      %c9_i32_164 = arith.constant 9 : i32
      %461 = vector.broadcast %c9_i32_164 : i32 to vector<1x128xi32>
      %462 = arith.cmpi eq, %269, %461 : vector<1x128xi32>
      %c9_165 = arith.constant 9 : index
      %463 = memref.load %arg5[%c9_165] : memref<11xf32, #tpu.memory_space<smem>>
      %464 = vector.broadcast %463 : f32 to vector<1x128xf32>
      %465 = arith.select %462, %464, %445 : vector<1x128xi1>, vector<1x128xf32>
      %c9_i32_166 = arith.constant 9 : i32
      %466 = vector.broadcast %c9_i32_166 : i32 to vector<1x128xi32>
      %467 = arith.cmpi eq, %269, %466 : vector<1x128xi32>
      %c10_167 = arith.constant 10 : index
      %468 = memref.load %arg5[%c10_167] : memref<11xf32, #tpu.memory_space<smem>>
      %469 = vector.broadcast %468 : f32 to vector<1x128xf32>
      %470 = arith.select %467, %469, %450 : vector<1x128xi1>, vector<1x128xf32>
      %471 = arith.subf %455, %460 : vector<1x128xf32>
      %472 = arith.subf %465, %470 : vector<1x128xf32>
      %cst_168 = arith.constant 1.000000e+00 : f32
      %473 = vector.broadcast %cst_168 : f32 to vector<1x128xf32>
      %474 = arith.maximumf %471, %473 : vector<1x128xf32>
      %475 = math.log %474 : vector<1x128xf32>
      %cst_169 = arith.constant -7.500000e-01 : f32
      %476 = vector.broadcast %cst_169 : f32 to vector<1x128xf32>
      %477 = arith.mulf %476, %475 : vector<1x128xf32>
      %478 = math.exp %477 : vector<1x128xf32>
      %c10_i32 = arith.constant 10 : i32
      %479 = vector.broadcast %c10_i32 : i32 to vector<1x128xi32>
      %480 = arith.cmpi slt, %269, %479 : vector<1x128xi32>
      %481 = arith.mulf %478, %472 : vector<1x128xf32>
      %cst_170 = arith.constant 0.000000e+00 : f32
      %482 = vector.broadcast %cst_170 : f32 to vector<1x128xf32>
      %483 = arith.select %480, %481, %482 : vector<1x128xi1>, vector<1x128xf32>
      %484 = vector.shape_cast %483 : vector<1x128xf32> to vector<1x1x128xf32>
      %cst_171 = arith.constant dense<0.000000e+00> : vector<1xf32>
      %485 = vector.multi_reduction <add>, %484, %cst_171 [1, 2] : vector<1x1x128xf32> to vector<1xf32>
      %486 = vector.shape_cast %485 : vector<1xf32> to vector<1x1x1xf32>
      %487 = vector.extract %486[0, 0, 0] : f32 from vector<1x1x1xf32>
      %cst_172 = arith.constant 4.8828125E-4 : f32
      %488 = arith.mulf %487, %cst_172 : f32
      %c0_173 = arith.constant 0 : index
      %c0_174 = arith.constant 0 : index
      %489 = memref.load %arg3[%c0_173, %c0_174] : memref<1x1xf32, #tpu.memory_space<smem>>
      memref.store %488, %arg3[%c0_173, %c0_174] : memref<1x1xf32, #tpu.memory_space<smem>>
    } else {
    }
    return
  }
  func.func @transform_0(%arg0: i32) -> (i32, i32) {
    %c0_i32 = arith.constant 0 : i32
    %c0_i32_0 = arith.constant 0 : i32
    return %arg0, %c0_i32 : i32, i32
  }
  func.func @transform_1(%arg0: i32) -> (i32, i32) {
    %c0_i32 = arith.constant 0 : i32
    %c0_i32_0 = arith.constant 0 : i32
    return %arg0, %c0_i32 : i32, i32
  }
  func.func @transform_2(%arg0: i32) -> (i32, i32) {
    %c0_i32 = arith.constant 0 : i32
    %c0_i32_0 = arith.constant 0 : i32
    %c0_i32_1 = arith.constant 0 : i32
    return %c0_i32, %c0_i32_0 : i32, i32
  }
}

</mosaic_0001>

<bundles_post_ra>
// kernel: tpu_custom_call.1
= control target key start
LH: loop header
LB: loop body
LE: loop exit
PB: predicated region body
PF: predicated region fallthrough
CT: control target
= control target key end

     0   :  { %7 = vsyncpa [#allocation5], 0  ;;  %s1102_s0 = inlined_call_operand.hbm [shape: f32[16,128], index: 0, kind: input, shape index: {}]   ;;  %s1103_s1 = inlined_call_operand.hbm [shape: f32[16,128], index: 1, kind: input, shape index: {}]   ;;  %s1104_s2 = inlined_call_operand.hbm [shape: f32[1,1], index: 2, kind: output, shape index: {}]  }
   0x1   :  { %8 = vsyncpa [#allocation8], 0 }
   0x2   :  { %9 = vsyncpa [#allocation6], 0  ;;  %s851_s9 = smov [#allocation4]  }
   0x3   :  { %s15_s10 = sshll.u32 %s851_s9, 4  ;;  %s16_s10 = int_to_ptr.vmem [resolvable:$true] %s15_s10 }
   0x4   :  { %s805_s11 = scalar_lea.vmem %s16_s10, 256  ;;  %p810_p1 = scmp.lt.s32.totalorder %s16_s10, %s16_s10 }
   0x5   :  { %p806_p0 = scmp.ne.s32.totalorder %s16_s10, %s805_s11  ;;  %p811_p2 = scmp.lt.s32.totalorder %s805_s11, %s805_s11 }
   0x7   :  { %p812_p3 = por %p811_p2, %p810_p1 }
   0x9   :  { %p813_p4 = pnand %p812_p3, %p806_p0 }
   0xb   :  { %816 = shalt.err (!%p813_p4)
}
   0xc   :  { %s852_s12 = smov 128   ;;  %s853_s13 = smov 8  }
   0xd   :  { %21 = dma.hbm_to_vmem [thread:$0]  %s1102_s0, 256, %s16_s10, [#allocation5], %s852_s12, %s852_s12, %s853_s13  }
   0xe   :  { %s854_s16 = smov [#allocation7]  }
   0xf   :  { %s27_s17 = sshll.u32 %s854_s16, 4  ;;  %s28_s17 = int_to_ptr.vmem [resolvable:$true] %s27_s17 }
  0x10   :  { %s825_s18 = scalar_lea.vmem %s28_s17, 256  ;;  %p830_p6 = scmp.lt.s32.totalorder %s28_s17, %s28_s17 }
  0x11   :  { %p826_p5 = scmp.ne.s32.totalorder %s28_s17, %s825_s18  ;;  %p831_p7 = scmp.lt.s32.totalorder %s825_s18, %s825_s18 }
  0x13   :  { %p832_p8 = por %p831_p7, %p830_p6 }
  0x15   :  { %p833_p9 = pnand %p832_p8, %p826_p5 }
  0x17   :  { %836 = shalt.err (!%p833_p9)
}
  0x18   :  { %33 = dma.hbm_to_vmem [thread:$0]  %s1103_s1, 256, %s28_s17, [#allocation8], %s852_s12, %s852_s12, %s853_s13  }
  0x19   :  { %845 = dma.done.wait [#allocation5], 256  }
  0x1a   :  { %846 = vsyncadd [#allocation5], 4294967040 }
  0x1b   :  { %847 = dma.done.wait [#allocation8], 256  }
  0x1c   :  { %848 = vsyncadd [#allocation8], 4294967040  ;;  %v116_v0 = vlaneseq  ;;  %v88_v1 = vld [vmem:[#allocation4] sm:$0xff]  ;;  %v89_v2 = vld [vmem:[#allocation4 + $0x8] sm:$0xff]  ;;  %v855_v38 = vmov 0.0   ;;  %s856_s14 = smov [#allocation9]  }
  0x1d   :  { %v90_v3 = vld [vmem:[#allocation7] sm:$0xff]  ;;  %v91_v4 = vld [vmem:[#allocation7 + $0x8] sm:$0xff]  ;;  %785 = vtanh.f32 %v88_v1 }
  0x1e   :  { %787 = vtanh.f32 %v89_v2  ;;  %v92_v5 = vsub.f32 %v88_v1, %v90_v3  ;;  %v93_v6 = vsub.f32 %v89_v2, %v91_v4  ;;  %v117_v7 = vshrl.u32 %v116_v0, 7 }
  0x1f   :  { %789 = vtanh.f32 %v90_v3  ;;  %v878_v11 = vand.u32 127, %v116_v0 }
  0x20   :  { %791 = vtanh.f32 %v91_v4  ;;  %v94_v8 = vand.u32 2147483647, %v92_v5  ;;  %v95_v9 = vand.u32 2147483647, %v93_v6  ;;  %v118_v10 = vadd.s32 8, %v117_v7 }
  0x21   :  { %v122_v12 = vmul.u32 128, %v117_v7 }
  0x22   :  { %v98_v13 = vmul.f32 %v94_v8, %v94_v8  ;;  %v99_v14 = vmul.f32 %v95_v9, %v95_v9  ;;  %v123_v15 = vmul.u32 128, %v118_v10  ;;  %v672_v20 = vadd.f32 -0.01, %v94_v8 }
  0x23   :  { %v127_v16 = vadd.s32 %v122_v12, %v878_v11  ;;  %v673_v21 = vadd.f32 -0.01, %v95_v9  ;;  %vm96_vm0 = vcmp.lt.f32.partialorder %v94_v8, 0.02  ;;  %vm97_vm1 = vcmp.lt.f32.partialorder %v95_v9, 0.02 }
  0x24   :  { %v100_v18 = vmul.f32 25.0, %v98_v13  ;;  %v101_v19 = vmul.f32 25.0, %v99_v14  ;;  %v128_v23 = vadd.s32 %v123_v15, %v878_v11 }
  0x25   :  { %vm129_vm2 = vcmp.lt.s32.totalorder %v127_v16, 2048 }
  0x26   :  { %v104_v28 = vsel %vm96_vm0, %v100_v18, %v672_v20  ;;  %v105_v29 = vsel %vm97_vm1, %v101_v19, %v673_v21  ;;  %vm130_vm3 = vcmp.lt.s32.totalorder %v128_v23, 2048 }
  0x27   :  { %v886_v34 = vsel %vm129_vm2, %v104_v28, 0.0  ;;  %v888_v35 = vsel %vm130_vm3, %v105_v29, 0.0 }
  0x2a   :  { %v786_v17 = vpop.eup %785 }
  0x2b   :  { %v788_v22 = vpop.eup %787 }
  0x2c   :  { %v790_v24 = vpop.eup %789 }
  0x2d   :  { %v792_v25 = vpop.eup %791  ;;  %v110_v26 = vsub.f32 %v786_v17, %v790_v24 }
  0x2e   :  { %v111_v27 = vsub.f32 %v788_v22, %v792_v25 }
  0x2f   :  { %v112_v30 = vand.u32 2147483647, %v110_v26 }
  0x30   :  { %v113_v31 = vand.u32 2147483647, %v111_v27 }
  0x31   :  { %v882_v32 = vsel %vm129_vm2, %v112_v30, -1.0  ;;  %v884_v33 = vmul.f32 10.0, %v112_v30 }
  0x32   :  { %v890_v36 = vmul.f32 10.0, %v113_v31  ;;  %v892_v37 = vsel %vm130_vm3, %v113_v31, -1.0  ;;  %vm173_vm4 = vcmp.ge.f32.partialorder %v882_v32, 0.1  ;;  %vm135_vm5 = vcmp.ge.f32.partialorder %v882_v32, 0.0 }
  0x33   :  { %vm174_vm6 = vcmp.ge.f32.partialorder %v892_v37, 0.1  ;;  %v676_v39 = vsel %vm173_vm4, 1.0, %v855_v38  ;;  %vm136_vm7 = vcmp.ge.f32.partialorder %v892_v37, 0.0  ;;  %v674_v40 = vsel %vm135_vm5, 1.0, %v855_v38 }
  0x34   :  { %v677_v41 = vsel %vm174_vm6, 1.0, %v855_v38  ;;  %v675_v42 = vsel %vm136_vm7, 1.0, %v855_v38  ;;  %vm211_vm8 = vcmp.ge.f32.partialorder %v882_v32, 0.2  ;;  %vm212_vm9 = vcmp.ge.f32.partialorder %v892_v37, 0.2 }
  0x35   :  { %v179_v43 = vadd.f32 %v677_v41, %v676_v39  ;;  %v141_v44 = vadd.f32 %v675_v42, %v674_v40  ;;  %v680_v45 = vsel %vm211_vm8, 1.0, %v855_v38  ;;  %v681_v46 = vsel %vm212_vm9, 1.0, %v855_v38 }
  0x36   :  { %v217_v47 = vadd.f32 %v681_v46, %v680_v45  ;;  %vm193_vm10 = vcmp.ge.f32.partialorder %v884_v33, 1.0  ;;  %vm194_vm11 = vcmp.ge.f32.partialorder %v890_v36, 1.0  ;;  %vm249_vm12 = vcmp.ge.f32.partialorder %v882_v32, 0.3 }
  0x37   :  { %180 = vadd.xlane.f32.xlu1 %v179_v43  ;;  %142 = vadd.xlane.f32.xlu0 %v141_v44  ;;  %v195_v48 = vsel %vm193_vm10, %v886_v34, 0.0  ;;  %v196_v49 = vsel %vm194_vm11, %v888_v35, 0.0  ;;  %vm250_vm13 = vcmp.ge.f32.partialorder %v892_v37, 0.3  ;;  %v684_v50 = vsel %vm249_vm12, 1.0, %v855_v38 }
  0x38   :  { %v197_v51 = vadd.f32 %v196_v49, %v195_v48  ;;  %v685_v52 = vsel %vm250_vm13, 1.0, %v855_v38  ;;  %vm231_vm14 = vcmp.ge.f32.partialorder %v884_v33, 2.0  ;;  %vm232_vm15 = vcmp.ge.f32.partialorder %v890_v36, 2.0 }
  0x39   :  { %v233_v53 = vsel %vm231_vm14, %v886_v34, 0.0  ;;  %v234_v54 = vsel %vm232_vm15, %v888_v35, 0.0  ;;  %vm287_vm0 = vcmp.ge.f32.partialorder %v882_v32, 0.4  ;;  %vm288_vm1 = vcmp.ge.f32.partialorder %v892_v37, 0.4 }
  0x3a   :  { %vm269_vm2 = vcmp.ge.f32.partialorder %v884_v33, 3.0  ;;  %v255_v55 = vadd.f32 %v685_v52, %v684_v50  ;;  %v235_v56 = vadd.f32 %v234_v54, %v233_v53  ;;  %vm270_vm3 = vcmp.ge.f32.partialorder %v890_v36, 3.0 }
  0x3b   :  { %218 = vadd.xlane.f32.xlu0 %v217_v47  ;;  %198 = vadd.xlane.f32.xlu1 %v197_v51  ;;  %v688_v57 = vsel %vm287_vm0, 1.0, %v855_v38  ;;  %v689_v58 = vsel %vm288_vm1, 1.0, %v855_v38  ;;  %v271_v59 = vsel %vm269_vm2, %v886_v34, 0.0  ;;  %v272_v60 = vsel %vm270_vm3, %v888_v35, 0.0 }
  0x3c   :  { %vm325_vm4 = vcmp.ge.f32.partialorder %v882_v32, 0.5  ;;  %vm326_vm5 = vcmp.ge.f32.partialorder %v892_v37, 0.5  ;;  %vm307_vm6 = vcmp.ge.f32.partialorder %v884_v33, 4.0  ;;  %vm308_vm7 = vcmp.ge.f32.partialorder %v890_v36, 4.0 }
  0x3d   :  { %v293_v61 = vadd.f32 %v689_v58, %v688_v57  ;;  %v273_v62 = vadd.f32 %v272_v60, %v271_v59  ;;  %v692_v63 = vsel %vm325_vm4, 1.0, %v855_v38  ;;  %v693_v0 = vsel %vm326_vm5, 1.0, %v855_v38 }
  0x3e   :  { %v309_v1 = vsel %vm307_vm6, %v886_v34, 0.0  ;;  %v310_v2 = vsel %vm308_vm7, %v888_v35, 0.0  ;;  %vm363_vm8 = vcmp.ge.f32.partialorder %v882_v32, 0.6  ;;  %vm364_vm9 = vcmp.ge.f32.partialorder %v892_v37, 0.6 }
  0x3f   :  { %256 = vadd.xlane.f32.xlu0 %v255_v55  ;;  %236 = vadd.xlane.f32.xlu1 %v235_v56  ;;  %vm345_vm10 = vcmp.ge.f32.partialorder %v884_v33, 5.0  ;;  %vm346_vm11 = vcmp.ge.f32.partialorder %v890_v36, 5.0  ;;  %v331_v3 = vadd.f32 %v693_v0, %v692_v63  ;;  %v311_v4 = vadd.f32 %v310_v2, %v309_v1 }
  0x40   :  { %v696_v5 = vsel %vm363_vm8, 1.0, %v855_v38  ;;  %v697_v6 = vsel %vm364_vm9, 1.0, %v855_v38  ;;  %v347_v7 = vsel %vm345_vm10, %v886_v34, 0.0  ;;  %v348_v8 = vsel %vm346_vm11, %v888_v35, 0.0 }
  0x41   :  { %vm401_vm12 = vcmp.ge.f32.partialorder %v882_v32, 0.7  ;;  %vm402_vm13 = vcmp.ge.f32.partialorder %v892_v37, 0.7  ;;  %vm383_vm14 = vcmp.ge.f32.partialorder %v884_v33, 6.0  ;;  %vm384_vm15 = vcmp.ge.f32.partialorder %v890_v36, 6.0 }
  0x42   :  { %v369_v9 = vadd.f32 %v697_v6, %v696_v5  ;;  %v349_v10 = vadd.f32 %v348_v8, %v347_v7  ;;  %v700_v12 = vsel %vm401_vm12, 1.0, %v855_v38  ;;  %v701_v13 = vsel %vm402_vm13, 1.0, %v855_v38 }
  0x43   :  { %294 = vadd.xlane.f32.xlu0 %v293_v61  ;;  %274 = vadd.xlane.f32.xlu1 %v273_v62  ;;  %v385_v14 = vsel %vm383_vm14, %v886_v34, 0.0  ;;  %v386_v15 = vsel %vm384_vm15, %v888_v35, 0.0  ;;  %vm421_vm0 = vcmp.ge.f32.partialorder %v884_v33, 7.0  ;;  %vm422_vm1 = vcmp.ge.f32.partialorder %v890_v36, 7.0 }
  0x44   :  { %vm155_vm2 = vcmp.ge.f32.partialorder %v884_v33, 0.0  ;;  %vm156_vm3 = vcmp.ge.f32.partialorder %v890_v36, 0.0  ;;  %v407_v16 = vadd.f32 %v701_v13, %v700_v12  ;;  %v387_v17 = vadd.f32 %v386_v15, %v385_v14 }
  0x45   :  { %v423_v18 = vsel %vm421_vm0, %v886_v34, 0.0  ;;  %v424_v19 = vsel %vm422_vm1, %v888_v35, 0.0  ;;  %v157_v20 = vsel %vm155_vm2, %v886_v34, 0.0  ;;  %v158_v21 = vsel %vm156_vm3, %v888_v35, 0.0 }
  0x46   :  { %vm459_vm4 = vcmp.ge.f32.partialorder %v884_v33, 8.0  ;;  %vm460_vm5 = vcmp.ge.f32.partialorder %v890_v36, 8.0  ;;  %vm439_vm6 = vcmp.ge.f32.partialorder %v882_v32, 0.8  ;;  %vm440_vm7 = vcmp.ge.f32.partialorder %v892_v37, 0.8 }
  0x47   :  { %332 = vadd.xlane.f32.xlu0 %v331_v3  ;;  %312 = vadd.xlane.f32.xlu1 %v311_v4  ;;  %v425_v22 = vadd.f32 %v424_v19, %v423_v18  ;;  %v159_v23 = vadd.f32 %v158_v21, %v157_v20  ;;  %v461_v24 = vsel %vm459_vm4, %v886_v34, 0.0  ;;  %v462_v25 = vsel %vm460_vm5, %v888_v35, 0.0 }
  0x48   :  { %v704_v26 = vsel %vm439_vm6, 1.0, %v855_v38  ;;  %v705_v27 = vsel %vm440_vm7, 1.0, %v855_v38  ;;  %vm497_vm8 = vcmp.ge.f32.partialorder %v884_v33, 9.0  ;;  %vm498_vm9 = vcmp.ge.f32.partialorder %v890_v36, 9.0 }
  0x49   :  { %vm477_vm10 = vcmp.ge.f32.partialorder %v882_v32, 0.9  ;;  %vm478_vm11 = vcmp.ge.f32.partialorder %v892_v37, 0.9  ;;  %v463_v28 = vadd.f32 %v462_v25, %v461_v24  ;;  %v445_v29 = vadd.f32 %v705_v27, %v704_v26 }
  0x4a   :  { %v499_v30 = vsel %vm497_vm8, %v886_v34, 0.0  ;;  %v500_v31 = vsel %vm498_vm9, %v888_v35, 0.0  ;;  %v708_v39 = vsel %vm477_vm10, 1.0, %v855_v38  ;;  %v709_v40 = vsel %vm478_vm11, 1.0, %v855_v38 }
  0x4b   :  { %370 = vadd.xlane.f32.xlu0 %v369_v9  ;;  %350 = vadd.xlane.f32.xlu1 %v349_v10  ;;  %vm515_vm12 = vcmp.ge.f32.partialorder %v882_v32, 1.0  ;;  %vm516_vm13 = vcmp.ge.f32.partialorder %v892_v37, 1.0  ;;  %v501_v33 = vadd.f32 %v500_v31, %v499_v30  ;;  %v483_v36 = vadd.f32 %v709_v40, %v708_v39 }
  0x4c   :  { %v712_v41 = vsel %vm515_vm12, 1.0, %v855_v38  ;;  %v713_v42 = vsel %vm516_vm13, 1.0, %v855_v38  ;;  %vm538_vm14 = vcmp.eq.s32.totalorder %v878_v11, 0  ;;  %vm551_vm15 = vcmp.eq.s32.totalorder %v878_v11, 1 }
  0x4d   :  { %v521_v34 = vadd.f32 %v713_v42, %v712_v41  ;;  %vm560_vm0 = vcmp.eq.s32.totalorder %v878_v11, 2  ;;  %vm569_vm1 = vcmp.eq.s32.totalorder %v878_v11, 3  ;;  %vm578_vm2 = vcmp.eq.s32.totalorder %v878_v11, 4 }
  0x4e   :  { %vm587_vm3 = vcmp.eq.s32.totalorder %v878_v11, 5  ;;  %vm596_vm4 = vcmp.eq.s32.totalorder %v878_v11, 6  ;;  %vm605_vm5 = vcmp.eq.s32.totalorder %v878_v11, 7  ;;  %vm614_vm6 = vcmp.eq.s32.totalorder %v878_v11, 8 }
  0x4f   :  { %408 = vadd.xlane.f32.xlu0 %v407_v16  ;;  %388 = vadd.xlane.f32.xlu1 %v387_v17  ;;  %vm623_vm7 = vcmp.eq.s32.totalorder %v878_v11, 9  ;;  %vm640_vm8 = vcmp.lt.s32.totalorder %v878_v11, 10  ;;  %vm643_vm9 = vcmask 1040384  }
  0x53   :  { %426 = vadd.xlane.f32.xlu1 %v425_v22  ;;  %160 = vadd.xlane.f32.xlu0 %v159_v23 }
  0x57   :  { %464 = vadd.xlane.f32.xlu1 %v463_v28  ;;  %446 = vadd.xlane.f32.xlu0 %v445_v29 }
  0x5b   :  { %502 = vadd.xlane.f32.xlu1 %v501_v33  ;;  %484 = vadd.xlane.f32.xlu0 %v483_v36 }
  0x5f   :  { %522 = vadd.xlane.f32.xlu0 %v521_v34 }
  0xc0   :  { %v181_v35 = vpop.xlane.xlu1 %180  ;;  %v143_v43 = vpop.xlane.xlu0 %142 }
  0xc1   :  { %v144_v44 = vrot.slane %v143_v43, 4  ;;  %v182_v50 = vrot.slane %v181_v35, 4 }
  0xc3   :  { %v145_v45 = vadd.f32 %v144_v44, %v143_v43  ;;  %v183_v55 = vadd.f32 %v182_v50, %v181_v35 }
  0xc4   :  { %v219_v46 = vpop.xlane.xlu0 %218  ;;  %v199_v32 = vpop.xlane.xlu1 %198 }
  0xc5   :  { %v146_v47 = vrot.slane %v145_v45, 2  ;;  %v200_v52 = vrot.slane %v199_v32, 4  ;;  %v220_v56 = vrot.slane %v219_v46, 4  ;;  %v184_v60 = vrot.slane %v183_v55, 2 }
  0xc7   :  { %v147_v37 = vadd.f32 %v146_v47, %v145_v45  ;;  %v201_v57 = vadd.f32 %v200_v52, %v199_v32  ;;  %v221_v61 = vadd.f32 %v220_v56, %v219_v46  ;;  %v185_v4 = vadd.f32 %v184_v60, %v183_v55 }
  0xc8   :  { %v257_v48 = vpop.xlane.xlu0 %256  ;;  %v237_v49 = vpop.xlane.xlu1 %236 }
  0xc9   :  { %v148_v51 = vrot.slane %v147_v37, 1  ;;  %v258_v62 = vrot.slane %v257_v48, 4  ;;  %v238_v63 = vrot.slane %v237_v49, 4  ;;  %v202_v0 = vrot.slane %v201_v57, 2 }
  0xca   :  { %v222_v3 = vrot.slane %v221_v61, 2  ;;  %v186_v12 = vrot.slane %v185_v4, 1 }
  0xcb   :  { %v149_v38 = vadd.f32 %v148_v51, %v147_v37  ;;  %v259_v5 = vadd.f32 %v258_v62, %v257_v48  ;;  %v239_v6 = vadd.f32 %v238_v63, %v237_v49  ;;  %v203_v7 = vadd.f32 %v202_v0, %v201_v57 }
  0xcc   :  { %v295_v53 = vpop.xlane.xlu0 %294  ;;  %v275_v54 = vpop.xlane.xlu1 %274  ;;  %v223_v13 = vadd.f32 %v222_v3, %v221_v61  ;;  %v187_v24 = vadd.f32 %v186_v12, %v185_v4 }
  0xcd   :  { %735 = vpush %v149_v38  ;;  %v276_v8 = vrot.slane %v275_v54, 4  ;;  %v260_v14 = vrot.slane %v259_v5, 2  ;;  %v240_v15 = vrot.slane %v239_v6, 2  ;;  %v296_v16 = vrot.slane %v295_v53, 4 }
  0xce   :  { %v204_v18 = vrot.slane %v203_v7, 1  ;;  %v224_v25 = vrot.slane %v223_v13, 1 }
  0xcf   :  { %v277_v19 = vadd.f32 %v276_v8, %v275_v54  ;;  %v297_v26 = vadd.f32 %v296_v16, %v295_v53  ;;  %v241_v28 = vadd.f32 %v240_v15, %v239_v6  ;;  %v261_v29 = vadd.f32 %v260_v14, %v259_v5 }
  0xd0   :  { %v333_v58 = vpop.xlane.xlu0 %332  ;;  %v313_v59 = vpop.xlane.xlu1 %312  ;;  %v205_v40 = vadd.f32 %v204_v18, %v203_v7  ;;  %v225_v46 = vadd.f32 %v224_v25, %v223_v13 }
  0xd1   :  { %v314_v17 = vrot.slane %v313_v59, 4  ;;  %v334_v20 = vrot.slane %v333_v58, 4  ;;  %v278_v33 = vrot.slane %v277_v19, 2  ;;  %v298_v32 = vrot.slane %v297_v26, 2 }
  0xd2   :  { %v242_v48 = vrot.slane %v241_v28, 1  ;;  %v262_v52 = vrot.slane %v261_v29, 1 }
  0xd3   :  { %v315_v30 = vadd.f32 %v314_v17, %v313_v59  ;;  %v335_v36 = vadd.f32 %v334_v20, %v333_v58  ;;  %v279_v57 = vadd.f32 %v278_v33, %v277_v19 }
  0xd4   :  { %v371_v1 = vpop.xlane.xlu0 %370  ;;  %v351_v2 = vpop.xlane.xlu1 %350  ;;  %v243_v5 = vadd.f32 %v242_v48, %v241_v28  ;;  %v263_v17 = vadd.f32 %v262_v52, %v261_v29 }
  0xd5   :  { %v352_v27 = vrot.slane %v351_v2, 4  ;;  %v372_v31 = vrot.slane %v371_v1, 4  ;;  %v316_v49 = vrot.slane %v315_v30, 2  ;;  %v336_v53 = vrot.slane %v335_v36, 2 }
  0xd6   :  { %v280_v18 = vrot.slane %v279_v57, 1 }
  0xd7   :  { %v353_v47 = vadd.f32 %v352_v27, %v351_v2  ;;  %v373_v50 = vadd.f32 %v372_v31, %v371_v1  ;;  %v299_v2 = vadd.f32 %v298_v32, %v297_v26  ;;  %v317_v1 = vadd.f32 %v316_v49, %v315_v30 }
  0xd8   :  { %v409_v9 = vpop.xlane.xlu0 %408  ;;  %v389_v10 = vpop.xlane.xlu1 %388 }
  0xd9   :  { %v390_v41 = vrot.slane %v389_v10, 4  ;;  %v410_v43 = vrot.slane %v409_v9, 4  ;;  %v354_v62 = vrot.slane %v353_v47, 2  ;;  %v374_v3 = vrot.slane %v373_v50, 2 }
  0xda   :  { %v318_v26 = vrot.slane %v317_v1, 1 }
  0xdb   :  { %v391_v54 = vadd.f32 %v390_v41, %v389_v10  ;;  %v411_v58 = vadd.f32 %v410_v43, %v409_v9  ;;  %v337_v9 = vadd.f32 %v336_v53, %v335_v36  ;;  %v355_v19 = vadd.f32 %v354_v62, %v353_v47 }
  0xdc   :  { %v427_v21 = vpop.xlane.xlu1 %426  ;;  %v161_v22 = vpop.xlane.xlu0 %160  ;;  %v281_v36 = vadd.f32 %v280_v18, %v279_v57 }
  0xdd   :  { %v162_v23 = vrot.slane %v161_v22, 4  ;;  %v428_v42 = vrot.slane %v427_v21, 4  ;;  %v392_v6 = vrot.slane %v391_v54, 2  ;;  %v412_v13 = vrot.slane %v411_v58, 2 }
  0xde   :  { %v338_v31 = vrot.slane %v337_v9, 1  ;;  %v356_v29 = vrot.slane %v355_v19, 1 }
  0xdf   :  { %v163_v39 = vadd.f32 %v162_v23, %v161_v22  ;;  %v429_v38 = vadd.f32 %v428_v42, %v427_v21  ;;  %v300_v22 = vrot.slane %v299_v2, 1  ;;  %v375_v23 = vadd.f32 %v374_v3, %v373_v50 }
  0xe0   :  { %v465_v34 = vpop.xlane.xlu1 %464  ;;  %v447_v35 = vpop.xlane.xlu0 %446  ;;  %v393_v27 = vadd.f32 %v392_v6, %v391_v54  ;;  %v339_v32 = vadd.f32 %v338_v31, %v337_v9 }
  0xe1   :  { %v164_v44 = vrot.slane %v163_v39, 2  ;;  %v448_v45 = vrot.slane %v447_v35, 4  ;;  %v466_v37 = vrot.slane %v465_v34, 4  ;;  %v430_v7 = vrot.slane %v429_v38, 2 }
  0xe2   :  { %v301_v42 = vadd.f32 %v300_v22, %v299_v2  ;;  %v394_v43 = vrot.slane %v393_v27, 1 }
  0xe3   :  { %v165_v51 = vadd.f32 %v164_v44, %v163_v39  ;;  %v449_v59 = vadd.f32 %v448_v45, %v447_v35  ;;  %v467_v63 = vadd.f32 %v466_v37, %v465_v34  ;;  %v431_v28 = vadd.f32 %v430_v7, %v429_v38 }
  0xe4   :  { %v503_v55 = vpop.xlane.xlu1 %502  ;;  %v485_v56 = vpop.xlane.xlu0 %484  ;;  %v413_v39 = vadd.f32 %v412_v13, %v411_v58  ;;  %v376_v34 = vrot.slane %v375_v23, 1  ;;  %v319_v35 = vadd.f32 %v318_v26, %v317_v1  ;;  %v357_v37 = vadd.f32 %v356_v29, %v355_v19 }
  0xe5   :  { %v504_v60 = vrot.slane %v503_v55, 4  ;;  %v486_v61 = vrot.slane %v485_v56, 4  ;;  %v166_v0 = vrot.slane %v165_v51, 1  ;;  %v450_v14 = vrot.slane %v449_v59, 2 }
  0xe6   :  { %v468_v16 = vrot.slane %v467_v63, 2  ;;  %v377_v49 = vadd.f32 %v376_v34, %v375_v23 }
  0xe7   :  { %v487_v4 = vadd.f32 %v486_v61, %v485_v56  ;;  %v505_v8 = vadd.f32 %v504_v60, %v503_v55  ;;  %v167_v12 = vadd.f32 %v166_v0, %v165_v51  ;;  %v451_v33 = vadd.f32 %v450_v14, %v449_v59 }
  0xe8   :  { %v523_v10 = vpop.xlane.xlu0 %522  ;;  %v469_v41 = vadd.f32 %v468_v16, %v467_v63  ;;  %v395_v51 = vadd.f32 %v394_v43, %v393_v27 }
  0xe9   :  { %v524_v15 = vrot.slane %v523_v10, 4  ;;  %737 = vpush %v167_v12  ;;  %v488_v20 = vrot.slane %v487_v4, 2  ;;  %v506_v25 = vrot.slane %v505_v8, 2  ;;  %v452_v47 = vrot.slane %v451_v33, 1 }
  0xea   :  { %739 = vpush %v187_v24  ;;  %v470_v48 = vrot.slane %v469_v41, 1 }
  0xeb   :  { %v525_v21 = vadd.f32 %v524_v15, %v523_v10  ;;  %741 = vpush %v205_v40  ;;  %v489_v24 = vadd.f32 %v488_v20, %v487_v4  ;;  %v432_v40 = vrot.slane %v431_v28, 1  ;;  %v507_v44 = vadd.f32 %v506_v25, %v505_v8 }
  0xec   :  { %743 = vpush %v225_v46  ;;  %v414_v46 = vrot.slane %v413_v39, 1  ;;  %v453_v38 = vadd.f32 %v452_v47, %v451_v33  ;;  %v471_v56 = vadd.f32 %v470_v48, %v469_v41 }
  0xed   :  { %v526_v30 = vrot.slane %v525_v21, 2  ;;  %745 = vpush %v243_v5  ;;  %v490_v50 = vrot.slane %v489_v24, 1  ;;  %v433_v52 = vadd.f32 %v432_v40, %v431_v28  ;;  %v508_v53 = vrot.slane %v507_v44, 1 }
  0xee   :  { %747 = vpush %v263_v17  ;;  %v415_v54 = vadd.f32 %v414_v46, %v413_v39 }
  0xef   :  { %749 = vpush %v281_v36  ;;  %v527_v45 = vadd.f32 %v526_v30, %v525_v21  ;;  %v491_v57 = vadd.f32 %v490_v50, %v489_v24  ;;  %v509_v58 = vadd.f32 %v508_v53, %v507_v44 }
  0xf0   :  { %751 = vpush %v301_v42 }
  0xf1   :  { %753 = vpush %v319_v35  ;;  %v528_v55 = vrot.slane %v527_v45, 1 }
  0xf2   :  { %755 = vpush %v339_v32 }
  0xf3   :  { %757 = vpush %v357_v37  ;;  %v529_v59 = vadd.f32 %v528_v55, %v527_v45 }
  0xf4   :  { %759 = vpush %v377_v49 }
  0xf5   :  { %761 = vpush %v395_v51 }
  0xf6   :  { %763 = vpush %v415_v54 }
  0xf7   :  { %765 = vpush %v433_v52 }
  0xf8   :  { %767 = vpush %v453_v38 }
  0xf9   :  { %769 = vpush %v471_v56 }
  0xfa   :  { %771 = vpush %v491_v57 }
  0xfb   :  { %773 = vpush %v509_v58 }
  0xfc   :  { %775 = vpush %v529_v59 }
  0xfe   :  { %s736_s0 = spop %735 }
  0xff   :  { %v540_v60 = vstv %s736_s0 }
 0x100   :  { %v541_v61 = vsel %vm538_vm14, %v540_v60, 0.0 }
 0x11a   :  { %s979_s1 = spop %737 }
 0x11b   :  { %s740_s21 = spop %739  ;;  %v546_v39 = vstv %s979_s1 }
 0x11c   :  { %v543_v62 = vstv %s740_s21  ;;  %s984_s22 = spop %741  ;;  %v547_v36 = vsel %vm538_vm14, %v546_v39, 0.0 }
 0x11d   :  { %v544_v63 = vsel %vm538_vm14, %v543_v62, 0.0  ;;  %v552_v0 = vsel %vm551_vm15, %v543_v62, %v541_v61  ;;  %s744_s23 = spop %743  ;;  %v549_v33 = vstv %s984_s22 }
 0x11e   :  { %v554_v2 = vstv %s744_s23  ;;  %s991_s24 = spop %745  ;;  %v550_v29 = vsel %vm538_vm14, %v549_v33, 0.0  ;;  %v556_v42 = vsel %vm551_vm15, %v549_v33, %v547_v36 }
 0x11f   :  { %v555_v3 = vsel %vm551_vm15, %v554_v2, %v544_v63  ;;  %v561_v4 = vsel %vm560_vm0, %v554_v2, %v552_v0  ;;  %s748_s25 = spop %747  ;;  %v558_v41 = vstv %s991_s24 }
 0x120   :  { %v563_v5 = vstv %s748_s25  ;;  %s998_s26 = spop %749  ;;  %v559_v34 = vsel %vm551_vm15, %v558_v41, %v550_v29  ;;  %v565_v35 = vsel %vm560_vm0, %v558_v41, %v556_v42 }
 0x121   :  { %v564_v1 = vsel %vm560_vm0, %v563_v5, %v555_v3  ;;  %v570_v6 = vsel %vm569_vm1, %v563_v5, %v561_v4  ;;  %s752_s27 = spop %751  ;;  %v567_v24 = vstv %s998_s26 }
 0x122   :  { %v572_v7 = vstv %s752_s27  ;;  %s1005_s28 = spop %753  ;;  %v568_v43 = vsel %vm560_vm0, %v567_v24, %v559_v34  ;;  %v574_v44 = vsel %vm569_vm1, %v567_v24, %v565_v35 }
 0x123   :  { %v573_v8 = vsel %vm569_vm1, %v572_v7, %v564_v1  ;;  %v579_v10 = vsel %vm578_vm2, %v572_v7, %v570_v6  ;;  %s756_s29 = spop %755  ;;  %v576_v40 = vstv %s1005_s28 }
 0x124   :  { %v581_v12 = vstv %s756_s29  ;;  %s1012_s30 = spop %757  ;;  %v577_v45 = vsel %vm569_vm1, %v576_v40, %v568_v43  ;;  %v583_v47 = vsel %vm578_vm2, %v576_v40, %v574_v44 }
 0x125   :  { %v582_v13 = vsel %vm578_vm2, %v581_v12, %v573_v8  ;;  %v588_v14 = vsel %vm587_vm3, %v581_v12, %v579_v10  ;;  %s760_s3 = spop %759  ;;  %v585_v46 = vstv %s1012_s30 }
 0x126   :  { %v590_v15 = vstv %s760_s3  ;;  %s1019_s4 = spop %761  ;;  %v586_v37 = vsel %vm578_vm2, %v585_v46, %v577_v45  ;;  %v592_v51 = vsel %vm587_vm3, %v585_v46, %v583_v47 }
 0x127   :  { %v591_v9 = vsel %vm587_vm3, %v590_v15, %v582_v13  ;;  %v597_v16 = vsel %vm596_vm4, %v590_v15, %v588_v14  ;;  %s764_s5 = spop %763  ;;  %v594_v49 = vstv %s1019_s4 }
 0x128   :  { %v599_v17 = vstv %s764_s5  ;;  %s1026_s6 = spop %765  ;;  %v595_v52 = vsel %vm587_vm3, %v594_v49, %v586_v37  ;;  %v601_v38 = vsel %vm596_vm4, %v594_v49, %v592_v51 }
 0x129   :  { %v600_v18 = vsel %vm596_vm4, %v599_v17, %v591_v9  ;;  %v606_v19 = vsel %vm605_vm5, %v599_v17, %v597_v16  ;;  %s768_s7 = spop %767  ;;  %v603_v54 = vstv %s1026_s6 }
 0x12a   :  { %v608_v20 = vstv %s768_s7  ;;  %s1033_s8 = spop %769  ;;  %v604_v55 = vsel %vm596_vm4, %v603_v54, %v595_v52  ;;  %v610_v57 = vsel %vm605_vm5, %v603_v54, %v601_v38 }
 0x12b   :  { %v609_v21 = vsel %vm605_vm5, %v608_v20, %v600_v18  ;;  %s772_s9 = spop %771  ;;  %v615_v22 = vsel %vm614_vm6, %v608_v20, %v606_v19  ;;  %v612_v56 = vstv %s1033_s8 }
 0x12c   :  { %v617_v23 = vstv %s772_s9  ;;  %s1040_s10 = spop %773  ;;  %v613_v58 = vsel %vm605_vm5, %v612_v56, %v604_v55  ;;  %v619_v60 = vsel %vm614_vm6, %v612_v56, %v610_v57 }
 0x12d   :  { %s776_s11 = spop %775  ;;  %v618_v25 = vsel %vm614_vm6, %v617_v23, %v609_v21  ;;  %v624_v27 = vsel %vm623_vm7, %v617_v23, %v615_v22  ;;  %v621_v59 = vstv %s1040_s10 }
 0x12e   :  { %v626_v26 = vstv %s776_s11  ;;  %v622_v61 = vsel %vm614_vm6, %v621_v59, %v613_v58  ;;  %v628_v62 = vsel %vm623_vm7, %v621_v59, %v619_v60 }
 0x12f   :  { %v627_v28 = vsel %vm623_vm7, %v626_v26, %v618_v25  ;;  %v631_v63 = vsel %vm623_vm7, 0.0, %v622_v61 }
 0x130   :  { %v632_v30 = vsub.f32 %v624_v27, %v627_v28  ;;  %v633_v0 = vsub.f32 %v628_v62, %v631_v63 }
 0x132   :  { %v634_v31 = vmax.f32 %v632_v30, 1.0 }
 0x134   :  { %793 = vlog2.f32 %v634_v31 }
 0x141   :  { %v794_v32 = vpop.eup %793 }
 0x142   :  { %v636_v48 = vmul.f32 0.6931472, %v794_v32 }
 0x144   :  { %v637_v50 = vmul.f32 -0.75, %v636_v48 }
 0x146   :  { %v638_v53 = vmul.f32 1.442695, %v637_v50 }
 0x148   :  { %795 = vpow2.f32 %v638_v53 }
 0x155   :  { %v796_v2 = vpop.eup %795 }
 0x156   :  { %v641_v3 = vmul.f32 %v796_v2, %v633_v0 }
 0x158   :  { %v642_v4 = vsel %vm640_vm8, %v641_v3, 0.0 }
 0x159   :  { %v644_v5 = vsel %vm643_vm9, %v642_v4, 0.0 }
 0x15a   :  { %645 = vadd.xlane.f32.xlu1 %v644_v5 }
 0x1e3   :  { %v646_v1 = vpop.xlane.xlu1 %645 }
 0x1e4   :  { %v647_v6 = vrot.slane %v646_v1, 4 }
 0x1e6   :  { %v648_v7 = vadd.f32 %v647_v6, %v646_v1 }
 0x1e8   :  { %v649_v8 = vrot.slane %v648_v7, 2 }
 0x1ea   :  { %v650_v10 = vadd.f32 %v649_v8, %v648_v7 }
 0x1ec   :  { %v651_v12 = vrot.slane %v650_v10, 1 }
 0x1ee   :  { %v652_v13 = vadd.f32 %v651_v12, %v650_v10 }
 0x1f0   :  { %777 = vpush %v652_v13 }
 0x221   :  { %s778_s12 = spop %777 }
 0x222   :  { %s654_s13 = smul.f32 0.00048828125, %s778_s12 }
 0x224   :  { %656 = sst [smem:[#allocation9]] %s654_s13 }
 0x225   :  { %664 = dma.smem_to_hbm %s856_s14, 16, %s1104_s2, [#allocation6]  }
 0x226   :  { %849 = dma.done.wait [#allocation6], 16  }
 0x227   :  { %850 = vsyncadd [#allocation6], 4294967280 }
 0x228   :  { %668 = sfence }
 0x229   :  { %669 = vsyncpa [#allocation5], 1 }
 0x22a   :  { %670 = vsyncpa [#allocation8], 1 }
 0x22b   :  { %671 = vsyncpa [#allocation6], 1 }

</bundles_post_ra>
